<compile_context>
chip_gen: v6e
topology: v6e:2x2x1
jax: 0.10.0
libtpu: 0.0.40
codegen_flags: <defaults>
</compile_context>

<pallas_src>
import math
from functools import partial

import jax
import jax.numpy as jnp
from jax.experimental import pallas as pl
from jax.experimental.pallas import tpu as pltpu


# ---------------------------------------------------------------------------
# Fused encoder-block kernel: one grid step per batch tile; everything
# (LN1 -> MHA -> residual -> LN2 -> MLP -> residual) computed in VMEM.
# ---------------------------------------------------------------------------
def _encoder_block_kernel(x_ref,
                          ln1w_ref, ln1b_ref,
                          inw_ref, inb_ref,       # in_proj weight pre-transposed: (D, 3D)
                          outw_ref, outb_ref,     # out_proj weight pre-transposed: (D, D)
                          ln2w_ref, ln2b_ref,
                          w1_ref, b1_ref,         # mlp fc1 weight pre-transposed: (D, M)
                          w2_ref, b2_ref,         # mlp fc2 weight pre-transposed: (M, D)
                          o_ref,
                          *, num_heads, eps, mlp_chunk, use_tanh_gelu, approx_recip):
    Bt, S, D = x_ref.shape
    H = num_heads
    hd = D // H
    R = Bt * S
    Mh = w1_ref.shape[1]
    cdtype = inw_ref.dtype          # compute dtype of the matmul operands (f32 or bf16)

    x = x_ref[...].reshape(R, D).astype(jnp.float32)          # (R, D) f32

    def layer_norm(v, w, b):
        mu = jnp.mean(v, axis=-1, keepdims=True)
        c = v - mu
        var = jnp.mean(c * c, axis=-1, keepdims=True)
        return c * jax.lax.rsqrt(var + eps) * w + b

    def mm(a, w):
        # matmul operands in the weight's compute dtype, f32 accumulation on the MXU
        return jnp.dot(a.astype(w.dtype), w, preferred_element_type=jnp.float32)

    if use_tanh_gelu:
        def gelu(v):                 # opt-in: moves most work to the EUP (tanh) slot
            return 0.5 * v * (1.0 + jnp.tanh(0.7978845608028654 * (v + 0.044715 * v * v * v)))
    else:
        def gelu(v):                 # matches nn.GELU() default (erf form)
            return 0.5 * v * (1.0 + jax.lax.erf(v * (1.0 / math.sqrt(2.0))))

    # ---- LayerNorm 1 -------------------------------------------------------
    xn = layer_norm(x, ln1w_ref[...], ln1b_ref[...])                        # (R, D) f32

    # ---- Multi-head self-attention ----------------------------------------
    # qkv = xn @ in_proj_w.T + in_proj_b ; in_proj_w.T was precomputed -> (D, 3D)
    qkv = mm(xn, inw_ref[...]) + inb_ref[...]                               # (R, 3D) f32
    qkv_c = qkv.astype(cdtype)

    scale = 1.0 / math.sqrt(hd)
    # Output projection is accumulated per head into a full-width (R, D) f32 buffer:
    # mathematically identical to concat(heads) @ out_proj.T, but every write is
    # lane-dense (no masked vst into a 64-lane scratch slice) and no VMEM scratch is used.
    proj_acc = jnp.zeros((R, D), jnp.float32)
    for h in range(H):
        # per-head column slices; reshapes only split the leading (row) dim
        q_h = qkv_c[:, 0 * D + h * hd: 0 * D + (h + 1) * hd].reshape(Bt, S, hd)
        k_h = qkv_c[:, 1 * D + h * hd: 1 * D + (h + 1) * hd].reshape(Bt, S, hd)
        v_h = qkv_c[:, 2 * D + h * hd: 2 * D + (h + 1) * hd].reshape(Bt, S, hd)

        s = jnp.einsum('bqd,bkd->bqk', q_h, k_h,
                       preferred_element_type=jnp.float32) * scale          # (Bt, S, S) f32
        s = s - jnp.max(s, axis=-1, keepdims=True)
        p = jnp.exp(s)
        # approx reciprocal (EUP vrcp) on the bf16 path; exact on the f32 path
        p = p * pl.reciprocal(jnp.sum(p, axis=-1, keepdims=True), approx=approx_recip)
        ho = jnp.einsum('bqk,bkd->bqd', p.astype(cdtype), v_h,
                        preferred_element_type=jnp.float32)                 # (Bt, S, hd) f32
        proj_acc = proj_acc + jnp.dot(ho.reshape(R, hd).astype(cdtype),
                                      outw_ref[h * hd:(h + 1) * hd, :],
                                      preferred_element_type=jnp.float32)   # (R, D) f32

    # residual 1 (dropout = identity)
    x1 = proj_acc + outb_ref[...] + x                                       # (R, D) f32

    # ---- LayerNorm 2 + chunked MLP -----------------------------------------
    yn = layer_norm(x1, ln2w_ref[...], ln2b_ref[...])                       # (R, D) f32
    yn_c = yn.astype(cdtype)
    y = jnp.zeros((R, D), jnp.float32)
    for start in range(0, Mh, mlp_chunk):
        c = min(mlp_chunk, Mh - start)
        h1 = (jnp.dot(yn_c, w1_ref[:, start:start + c],
                      preferred_element_type=jnp.float32)
              + b1_ref[:, start:start + c])                                 # (R, c) f32
        h1 = gelu(h1)
        y = y + jnp.dot(h1.astype(cdtype), w2_ref[start:start + c, :],
                        preferred_element_type=jnp.float32)                 # (R, D) f32
    y = y + b2_ref[...]

    # residual 2
    o_ref[...] = (x1 + y).reshape(Bt, S, D).astype(o_ref.dtype)


def _vmem_capacity_bytes():
    try:
        return int(pltpu.get_tpu_info().vmem_capacity_bytes)
    except Exception:
        return 128 * 2 ** 20


def _pick_block_batch(B, S, target_rows):
    """Fold batch elements per grid step to grow the matmul M-dim; prefer an even grid
    length (keeps both v7x TensorCores busy) and keep >=2 grid steps when possible."""
    divisors = [d for d in range(1, B + 1) if B % d == 0]
    fitting = [d for d in divisors if d * S <= max(S, target_rows)] or [1]
    even_grid = [d for d in fitting if (B // d) % 2 == 0]
    best = max(even_grid) if even_grid else max(fitting)
    if best == B and B > 1:
        best = max(d for d in divisors if d < B)
    return best


def encoder_block(x, params, num_heads, eps=1e-6, compute_dtype=jnp.bfloat16,
                  block_batch=None, mlp_chunk=1024, use_tanh_gelu=False,
                  single_buffer_weights=True):
    assert x.ndim == 3, f"Expected (batch, seq, hidden), got {x.shape}"
    B, S, D = x.shape
    assert D % num_heads == 0
    (ln1w, ln1b, inw, inb, outw, outb, ln2w, ln2b, w1, b1, w2, b2) = params

    cdtype = jnp.dtype(compute_dtype) if compute_dtype is not None else jnp.dtype(x.dtype)

    # --- one-time wrapper-side prep: pre-transpose weights, row-vector biases (f32) ---
    inw_t = jnp.asarray(inw).T.astype(cdtype)    # (D, 3D)
    outw_t = jnp.asarray(outw).T.astype(cdtype)  # (D, D)
    w1_t = jnp.asarray(w1).T.astype(cdtype)      # (D, M)
    w2_t = jnp.asarray(w2).T.astype(cdtype)      # (M, D)
    Mh = w1_t.shape[1]

    row = lambda a: jnp.asarray(a, jnp.float32).reshape(1, -1)
    ln1w2, ln1b2 = row(ln1w), row(ln1b)
    ln2w2, ln2b2 = row(ln2w), row(ln2b)
    inb2, outb2, b12, b22 = row(inb), row(outb), row(b1), row(b2)

    vmem_cap = _vmem_capacity_bytes()
    if block_batch is None:
        # generation-aware row target: smaller tiles when per-TC VMEM is small (v7x)
        target_rows = 512 if vmem_cap >= 96 * 2 ** 20 else 256
        block_batch = _pick_block_batch(B, S, target_rows)
    assert B % block_batch == 0, (B, block_batch)
    R = block_batch * S

    # MLP hidden-dim chunk: keep boundaries lane-aligned when actually chunking
    mc = max(1, min(int(mlp_chunk), Mh))
    if mc < Mh and mc % 128 != 0:
        mc = max(128, (mc // 128) * 128)

    operands = [x, ln1w2, ln1b2, inw_t, inb2, outw_t, outb2,
                ln2w2, ln2b2, w1_t, b12, w2_t, b22]

    kernel = partial(_encoder_block_kernel,
                     num_heads=num_heads, eps=float(eps), mlp_chunk=mc,
                     use_tanh_gelu=bool(use_tanh_gelu),
                     approx_recip=(cdtype == jnp.bfloat16))

    param_bytes = sum(int(a.size) * a.dtype.itemsize for a in operands[1:])
    io_block_bytes = 2 * R * D * jnp.dtype(x.dtype).itemsize      # in + out block
    # large in-kernel temporaries: x/xn/x1/yn/proj/y (f32), qkv (f32 + cdtype copy),
    # per-head score tensors, chunked h1 + GELU temps
    tmp_bytes = (6 * R * D * 4
                 + R * 3 * D * (4 + cdtype.itemsize)
                 + 4 * block_batch * S * S * 4
                 + 3 * R * mc * 4)

    def run(weight_pm):
        nbuf = 1 if weight_pm is not None else 2
        est = nbuf * param_bytes + 2 * io_block_bytes + tmp_bytes
        vmem_limit = int(min(vmem_cap, max(32 * 2 ** 20, est * 3 // 2 + (4 << 20))))

        def full(a):
            nd = a.ndim
            if weight_pm is None:
                return pl.BlockSpec(a.shape, lambda *_: (0,) * nd)
            return pl.BlockSpec(a.shape, lambda *_: (0,) * nd, pipeline_mode=weight_pm)

        return pl.pallas_call(
            kernel,
            out_shape=jax.ShapeDtypeStruct((B, S, D), x.dtype),
            grid_spec=pltpu.PrefetchScalarGridSpec(
                num_scalar_prefetch=0,
                grid=(B // block_batch,),
                in_specs=[pl.BlockSpec((block_batch, S, D), lambda b: (b, 0, 0))]
                         + [full(a) for a in operands[1:]],
                out_specs=pl.BlockSpec((block_batch, S, D), lambda b: (b, 0, 0)),
            ),
            compiler_params=pltpu.CompilerParams(
                dimension_semantics=("parallel",),
                vmem_limit_bytes=vmem_limit),
        )(*operands)

    if single_buffer_weights:
        # Single-buffer the constant-index weights (halves resident weight VMEM; key on
        # v7x). Fall back to default double buffering if pipeline_mode is unsupported.
        try:
            return run(pl.Buffered(1))
        except Exception:
            pass
    return run(None)


# ---------------------------------------------------------------------------
# Pure-JAX reference (same math) for a correctness check.
# ---------------------------------------------------------------------------
def encoder_block_ref(x, params, num_heads, eps=1e-6):
    (ln1w, ln1b, inw, inb, outw, outb, ln2w, ln2b, w1, b1, w2, b2) = params
    B, S, D = x.shape
    hd = D // num_heads

    def ln(v, w, b):
        mu = jnp.mean(v, axis=-1, keepdims=True)
        var = jnp.mean((v - mu) ** 2, axis=-1, keepdims=True)
        return (v - mu) / jnp.sqrt(var + eps) * w + b

    xn = ln(x, ln1w, ln1b)
    qkv = xn @ inw.T + inb
    q, k, v = jnp.split(qkv, 3, axis=-1)
    q = q.reshape(B, S, num_heads, hd).transpose(0, 2, 1, 3)
    k = k.reshape(B, S, num_heads, hd).transpose(0, 2, 1, 3)
    v = v.reshape(B, S, num_heads, hd).transpose(0, 2, 1, 3)
    scores = jnp.einsum("bhqd,bhkd->bhqk", q, k) / math.sqrt(hd)
    p = jax.nn.softmax(scores, axis=-1)
    attn = jnp.einsum("bhqk,bhkd->bhqd", p, v).transpose(0, 2, 1, 3).reshape(B, S, D)
    attn = attn @ outw.T + outb
    x1 = attn + x
    yn = ln(x1, ln2w, ln2b)
    h1 = jax.nn.gelu(yn @ w1.T + b1, approximate=False)
    y = h1 @ w2.T + b2
    return x1 + y


if __name__ == "__main__":
    B, S, D = 2, 8, 32
    num_heads = 4
    mlp_dim = 256

    key = jax.random.PRNGKey(0)
    ks = jax.random.split(key, 12)

    def u(k, shape, scale=0.1):
        return (jax.random.uniform(k, shape, jnp.float32) - 0.5) * 2 * scale

    x = jax.random.normal(ks[0], (B, S, D), jnp.float32)

    ln1w = jnp.ones((1, D), jnp.float32)
    ln1b = jnp.zeros((1, D), jnp.float32)
    inw = u(ks[1], (3 * D, D))
    inb = u(ks[2], (1, 3 * D), 0.01)
    outw = u(ks[3], (D, D))
    outb = u(ks[4], (1, D), 0.01)
    ln2w = jnp.ones((1, D), jnp.float32)
    ln2b = jnp.zeros((1, D), jnp.float32)
    w1 = u(ks[5], (mlp_dim, D))
    b1 = u(ks[6], (1, mlp_dim), 0.01)
    w2 = u(ks[7], (D, mlp_dim))
    b2 = u(ks[8], (1, D), 0.01)

    params = (ln1w, ln1b, inw, inb, outw, outb, ln2w, ln2b, w1, b1, w2, b2)

    ref = encoder_block_ref(x, params, num_heads)

    # f32 strict check (default heuristic batch tiling -> 2 grid steps, exact reciprocal).
    out_f32 = jax.block_until_ready(
        encoder_block(x, params, num_heads, compute_dtype=jnp.float32))
    assert out_f32.shape == (B, S, D)
    err_f32 = float(jnp.max(jnp.abs(out_f32 - ref)))
    assert jnp.allclose(out_f32, ref, atol=2e-4, rtol=2e-4), err_f32

    # Default path: bf16 matmul operands/weights, f32 accumulation & statistics, approx
    # softmax reciprocal, explicit batch folding (Bt=2) and chunked MLP (2 x 128 cols).
    out_bf16 = jax.block_until_ready(
        encoder_block(x, params, num_heads, block_batch=2, mlp_chunk=128))
    err_bf16 = float(jnp.max(jnp.abs(out_bf16 - ref)))
    assert err_bf16 < 5e-2, err_bf16

    print("KERNEL_OK")
</pallas_src>

<mosaic_0001>
module attributes {stable_mosaic.version = 11 : i64} {
  func.func @_encoder_block_kernel(%arg0: i32, %arg1: memref<1x8x32xf32, #tpu.memory_space<vmem>>, %arg2: memref<1x32xf32, #tpu.memory_space<vmem>>, %arg3: memref<1x32xf32, #tpu.memory_space<vmem>>, %arg4: memref<32x96xf32, #tpu.memory_space<vmem>>, %arg5: memref<1x96xf32, #tpu.memory_space<vmem>>, %arg6: memref<32x32xf32, #tpu.memory_space<vmem>>, %arg7: memref<1x32xf32, #tpu.memory_space<vmem>>, %arg8: memref<1x32xf32, #tpu.memory_space<vmem>>, %arg9: memref<1x32xf32, #tpu.memory_space<vmem>>, %arg10: memref<32x256xf32, #tpu.memory_space<vmem>>, %arg11: memref<1x256xf32, #tpu.memory_space<vmem>>, %arg12: memref<256x32xf32, #tpu.memory_space<vmem>>, %arg13: memref<1x32xf32, #tpu.memory_space<vmem>>, %arg14: memref<1x8x32xf32, #tpu.memory_space<vmem>>) attributes {dimension_semantics = [#tpu.dimension_semantics<parallel>], iteration_bounds = array<i64: 2>, scalar_prefetch = 0 : i64, scratch_operands = 0 : i64, tpu.core_type = #tpu.core_type<tc>, window_params = [{transform_indices = @transform_0, window_bounds = array<i64: 1, 8, 32>}, {pipeline_mode = #tpu.pipeline_mode<synchronous>, transform_indices = @transform_1, window_bounds = array<i64: 1, 32>}, {pipeline_mode = #tpu.pipeline_mode<synchronous>, transform_indices = @transform_2, window_bounds = array<i64: 1, 32>}, {pipeline_mode = #tpu.pipeline_mode<synchronous>, transform_indices = @transform_3, window_bounds = array<i64: 32, 96>}, {pipeline_mode = #tpu.pipeline_mode<synchronous>, transform_indices = @transform_4, window_bounds = array<i64: 1, 96>}, {pipeline_mode = #tpu.pipeline_mode<synchronous>, transform_indices = @transform_5, window_bounds = array<i64: 32, 32>}, {pipeline_mode = #tpu.pipeline_mode<synchronous>, transform_indices = @transform_6, window_bounds = array<i64: 1, 32>}, {pipeline_mode = #tpu.pipeline_mode<synchronous>, transform_indices = @transform_7, window_bounds = array<i64: 1, 32>}, {pipeline_mode = #tpu.pipeline_mode<synchronous>, transform_indices = @transform_8, window_bounds = array<i64: 1, 32>}, {pipeline_mode = #tpu.pipeline_mode<synchronous>, transform_indices = @transform_9, window_bounds = array<i64: 32, 256>}, {pipeline_mode = #tpu.pipeline_mode<synchronous>, transform_indices = @transform_10, window_bounds = array<i64: 1, 256>}, {pipeline_mode = #tpu.pipeline_mode<synchronous>, transform_indices = @transform_11, window_bounds = array<i64: 256, 32>}, {pipeline_mode = #tpu.pipeline_mode<synchronous>, transform_indices = @transform_12, window_bounds = array<i64: 1, 32>}, {transform_indices = @transform_13, window_bounds = array<i64: 1, 8, 32>}]} {
    %c0 = arith.constant 0 : index
    %c0_0 = arith.constant 0 : index
    %c0_1 = arith.constant 0 : index
    %0 = vector.load %arg1[%c0, %c0_0, %c0_1] : memref<1x8x32xf32, #tpu.memory_space<vmem>>, vector<1x8x32xf32>
    %1 = vector.shape_cast %0 : vector<1x8x32xf32> to vector<8x32xf32>
    %c0_2 = arith.constant 0 : index
    %c0_3 = arith.constant 0 : index
    %2 = vector.load %arg2[%c0_2, %c0_3] : memref<1x32xf32, #tpu.memory_space<vmem>>, vector<1x32xf32>
    %c0_4 = arith.constant 0 : index
    %c0_5 = arith.constant 0 : index
    %3 = vector.load %arg3[%c0_4, %c0_5] : memref<1x32xf32, #tpu.memory_space<vmem>>, vector<1x32xf32>
    %cst = arith.constant dense<0.000000e+00> : vector<8xf32>
    %4 = vector.multi_reduction <add>, %1, %cst [1] : vector<8x32xf32> to vector<8xf32>
    %5 = vector.shape_cast %4 : vector<8xf32> to vector<8x1xf32>
    %cst_6 = arith.constant 3.200000e+01 : f32
    %6 = vector.broadcast %cst_6 : f32 to vector<8x1xf32>
    %7 = arith.divf %5, %6 : vector<8x1xf32>
    %8 = vector.broadcast %7 : vector<8x1xf32> to vector<8x32xf32>
    %9 = arith.subf %1, %8 : vector<8x32xf32>
    %10 = arith.mulf %9, %9 : vector<8x32xf32>
    %cst_7 = arith.constant dense<0.000000e+00> : vector<8xf32>
    %11 = vector.multi_reduction <add>, %10, %cst_7 [1] : vector<8x32xf32> to vector<8xf32>
    %12 = vector.shape_cast %11 : vector<8xf32> to vector<8x1xf32>
    %cst_8 = arith.constant 3.200000e+01 : f32
    %13 = vector.broadcast %cst_8 : f32 to vector<8x1xf32>
    %14 = arith.divf %12, %13 : vector<8x1xf32>
    %cst_9 = arith.constant 9.99999997E-7 : f32
    %15 = vector.broadcast %cst_9 : f32 to vector<8x1xf32>
    %16 = arith.addf %14, %15 : vector<8x1xf32>
    %17 = math.rsqrt %16 : vector<8x1xf32>
    %18 = vector.broadcast %17 : vector<8x1xf32> to vector<8x32xf32>
    %19 = arith.mulf %9, %18 : vector<8x32xf32>
    %20 = vector.broadcast %2 : vector<1x32xf32> to vector<8x32xf32>
    %21 = arith.mulf %19, %20 : vector<8x32xf32>
    %22 = vector.broadcast %3 : vector<1x32xf32> to vector<8x32xf32>
    %23 = arith.addf %21, %22 : vector<8x32xf32>
    %c0_10 = arith.constant 0 : index
    %c0_11 = arith.constant 0 : index
    %24 = vector.load %arg4[%c0_10, %c0_11] : memref<32x96xf32, #tpu.memory_space<vmem>>, vector<32x96xf32>
    %cst_12 = arith.constant dense<0.000000e+00> : vector<8x96xf32>
    %25 = tpu.matmul %23, %24, %cst_12 {dimension_numbers = #tpu.dot_dimension_numbers<[1], [0], [0], [1], [0, 0, 1, 1], [], []>} : vector<8x32xf32>, vector<32x96xf32>, vector<8x96xf32> -> vector<8x96xf32>
    %c0_13 = arith.constant 0 : index
    %c0_14 = arith.constant 0 : index
    %26 = vector.load %arg5[%c0_13, %c0_14] : memref<1x96xf32, #tpu.memory_space<vmem>>, vector<1x96xf32>
    %27 = vector.broadcast %26 : vector<1x96xf32> to vector<8x96xf32>
    %28 = arith.addf %25, %27 : vector<8x96xf32>
    %cst_15 = arith.constant 0.000000e+00 : f32
    %29 = vector.broadcast %cst_15 : f32 to vector<8x32xf32>
    %30 = vector.extract_strided_slice %28 {offsets = [0, 0], sizes = [8, 8], strides = [1, 1]} : vector<8x96xf32> to vector<8x8xf32>
    %31 = vector.shape_cast %30 : vector<8x8xf32> to vector<1x8x8xf32>
    %32 = vector.extract_strided_slice %28 {offsets = [0, 32], sizes = [8, 8], strides = [1, 1]} : vector<8x96xf32> to vector<8x8xf32>
    %33 = vector.shape_cast %32 : vector<8x8xf32> to vector<1x8x8xf32>
    %34 = vector.extract_strided_slice %28 {offsets = [0, 64], sizes = [8, 8], strides = [1, 1]} : vector<8x96xf32> to vector<8x8xf32>
    %35 = vector.shape_cast %34 : vector<8x8xf32> to vector<1x8x8xf32>
    "tpu.trace_start"() <{level = 10 : i32, message = "bqd,bkd->bqk"}> : () -> ()
    %cst_16 = arith.constant dense<0.000000e+00> : vector<1x8x8xf32>
    %36 = tpu.matmul %31, %33, %cst_16 {dimension_numbers = #tpu.dot_dimension_numbers<[2], [2], [1], [1], [0, 0, 0, 1, 1, 1], [0], [0]>} : vector<1x8x8xf32>, vector<1x8x8xf32>, vector<1x8x8xf32> -> vector<1x8x8xf32>
    "tpu.trace_stop"() : () -> ()
    %cst_17 = arith.constant 0.353553385 : f32
    %37 = vector.broadcast %cst_17 : f32 to vector<1x8x8xf32>
    %38 = arith.mulf %36, %37 : vector<1x8x8xf32>
    %cst_18 = arith.constant dense<0xFF800000> : vector<1x8xf32>
    %39 = vector.multi_reduction <maximumf>, %38, %cst_18 [2] : vector<1x8x8xf32> to vector<1x8xf32>
    %40 = vector.shape_cast %39 : vector<1x8xf32> to vector<1x8x1xf32>
    %41 = vector.broadcast %40 : vector<1x8x1xf32> to vector<1x8x8xf32>
    %42 = arith.subf %38, %41 : vector<1x8x8xf32>
    %43 = math.exp %42 : vector<1x8x8xf32>
    %cst_19 = arith.constant dense<0.000000e+00> : vector<1x8xf32>
    %44 = vector.multi_reduction <add>, %43, %cst_19 [2] : vector<1x8x8xf32> to vector<1x8xf32>
    %45 = vector.shape_cast %44 : vector<1x8xf32> to vector<1x8x1xf32>
    %46 = tpu.reciprocal %45 : vector<1x8x1xf32> -> vector<1x8x1xf32>
    %47 = vector.broadcast %46 : vector<1x8x1xf32> to vector<1x8x8xf32>
    %48 = arith.mulf %43, %47 : vector<1x8x8xf32>
    "tpu.trace_start"() <{level = 10 : i32, message = "bqk,bkd->bqd"}> : () -> ()
    %cst_20 = arith.constant dense<0.000000e+00> : vector<1x8x8xf32>
    %49 = tpu.matmul %48, %35, %cst_20 {dimension_numbers = #tpu.dot_dimension_numbers<[2], [1], [1], [2], [0, 0, 0, 1, 1, 2], [0], [0]>} : vector<1x8x8xf32>, vector<1x8x8xf32>, vector<1x8x8xf32> -> vector<1x8x8xf32>
    "tpu.trace_stop"() : () -> ()
    %50 = vector.shape_cast %49 : vector<1x8x8xf32> to vector<8x8xf32>
    %c0_21 = arith.constant 0 : index
    %c0_22 = arith.constant 0 : index
    %51 = vector.load %arg6[%c0_21, %c0_22] : memref<32x32xf32, #tpu.memory_space<vmem>>, vector<8x32xf32>
    %cst_23 = arith.constant dense<0.000000e+00> : vector<8x32xf32>
    %52 = tpu.matmul %50, %51, %cst_23 {dimension_numbers = #tpu.dot_dimension_numbers<[1], [0], [0], [1], [0, 0, 1, 1], [], []>} : vector<8x8xf32>, vector<8x32xf32>, vector<8x32xf32> -> vector<8x32xf32>
    %53 = arith.addf %29, %52 : vector<8x32xf32>
    %54 = vector.extract_strided_slice %28 {offsets = [0, 8], sizes = [8, 8], strides = [1, 1]} : vector<8x96xf32> to vector<8x8xf32>
    %55 = vector.shape_cast %54 : vector<8x8xf32> to vector<1x8x8xf32>
    %56 = vector.extract_strided_slice %28 {offsets = [0, 40], sizes = [8, 8], strides = [1, 1]} : vector<8x96xf32> to vector<8x8xf32>
    %57 = vector.shape_cast %56 : vector<8x8xf32> to vector<1x8x8xf32>
    %58 = vector.extract_strided_slice %28 {offsets = [0, 72], sizes = [8, 8], strides = [1, 1]} : vector<8x96xf32> to vector<8x8xf32>
    %59 = vector.shape_cast %58 : vector<8x8xf32> to vector<1x8x8xf32>
    "tpu.trace_start"() <{level = 10 : i32, message = "bqd,bkd->bqk"}> : () -> ()
    %cst_24 = arith.constant dense<0.000000e+00> : vector<1x8x8xf32>
    %60 = tpu.matmul %55, %57, %cst_24 {dimension_numbers = #tpu.dot_dimension_numbers<[2], [2], [1], [1], [0, 0, 0, 1, 1, 1], [0], [0]>} : vector<1x8x8xf32>, vector<1x8x8xf32>, vector<1x8x8xf32> -> vector<1x8x8xf32>
    "tpu.trace_stop"() : () -> ()
    %cst_25 = arith.constant 0.353553385 : f32
    %61 = vector.broadcast %cst_25 : f32 to vector<1x8x8xf32>
    %62 = arith.mulf %60, %61 : vector<1x8x8xf32>
    %cst_26 = arith.constant dense<0xFF800000> : vector<1x8xf32>
    %63 = vector.multi_reduction <maximumf>, %62, %cst_26 [2] : vector<1x8x8xf32> to vector<1x8xf32>
    %64 = vector.shape_cast %63 : vector<1x8xf32> to vector<1x8x1xf32>
    %65 = vector.broadcast %64 : vector<1x8x1xf32> to vector<1x8x8xf32>
    %66 = arith.subf %62, %65 : vector<1x8x8xf32>
    %67 = math.exp %66 : vector<1x8x8xf32>
    %cst_27 = arith.constant dense<0.000000e+00> : vector<1x8xf32>
    %68 = vector.multi_reduction <add>, %67, %cst_27 [2] : vector<1x8x8xf32> to vector<1x8xf32>
    %69 = vector.shape_cast %68 : vector<1x8xf32> to vector<1x8x1xf32>
    %70 = tpu.reciprocal %69 : vector<1x8x1xf32> -> vector<1x8x1xf32>
    %71 = vector.broadcast %70 : vector<1x8x1xf32> to vector<1x8x8xf32>
    %72 = arith.mulf %67, %71 : vector<1x8x8xf32>
    "tpu.trace_start"() <{level = 10 : i32, message = "bqk,bkd->bqd"}> : () -> ()
    %cst_28 = arith.constant dense<0.000000e+00> : vector<1x8x8xf32>
    %73 = tpu.matmul %72, %59, %cst_28 {dimension_numbers = #tpu.dot_dimension_numbers<[2], [1], [1], [2], [0, 0, 0, 1, 1, 2], [0], [0]>} : vector<1x8x8xf32>, vector<1x8x8xf32>, vector<1x8x8xf32> -> vector<1x8x8xf32>
    "tpu.trace_stop"() : () -> ()
    %74 = vector.shape_cast %73 : vector<1x8x8xf32> to vector<8x8xf32>
    %c8 = arith.constant 8 : index
    %c0_29 = arith.constant 0 : index
    %75 = vector.load %arg6[%c8, %c0_29] : memref<32x32xf32, #tpu.memory_space<vmem>>, vector<8x32xf32>
    %cst_30 = arith.constant dense<0.000000e+00> : vector<8x32xf32>
    %76 = tpu.matmul %74, %75, %cst_30 {dimension_numbers = #tpu.dot_dimension_numbers<[1], [0], [0], [1], [0, 0, 1, 1], [], []>} : vector<8x8xf32>, vector<8x32xf32>, vector<8x32xf32> -> vector<8x32xf32>
    %77 = arith.addf %53, %76 : vector<8x32xf32>
    %78 = vector.extract_strided_slice %28 {offsets = [0, 16], sizes = [8, 8], strides = [1, 1]} : vector<8x96xf32> to vector<8x8xf32>
    %79 = vector.shape_cast %78 : vector<8x8xf32> to vector<1x8x8xf32>
    %80 = vector.extract_strided_slice %28 {offsets = [0, 48], sizes = [8, 8], strides = [1, 1]} : vector<8x96xf32> to vector<8x8xf32>
    %81 = vector.shape_cast %80 : vector<8x8xf32> to vector<1x8x8xf32>
    %82 = vector.extract_strided_slice %28 {offsets = [0, 80], sizes = [8, 8], strides = [1, 1]} : vector<8x96xf32> to vector<8x8xf32>
    %83 = vector.shape_cast %82 : vector<8x8xf32> to vector<1x8x8xf32>
    "tpu.trace_start"() <{level = 10 : i32, message = "bqd,bkd->bqk"}> : () -> ()
    %cst_31 = arith.constant dense<0.000000e+00> : vector<1x8x8xf32>
    %84 = tpu.matmul %79, %81, %cst_31 {dimension_numbers = #tpu.dot_dimension_numbers<[2], [2], [1], [1], [0, 0, 0, 1, 1, 1], [0], [0]>} : vector<1x8x8xf32>, vector<1x8x8xf32>, vector<1x8x8xf32> -> vector<1x8x8xf32>
    "tpu.trace_stop"() : () -> ()
    %cst_32 = arith.constant 0.353553385 : f32
    %85 = vector.broadcast %cst_32 : f32 to vector<1x8x8xf32>
    %86 = arith.mulf %84, %85 : vector<1x8x8xf32>
    %cst_33 = arith.constant dense<0xFF800000> : vector<1x8xf32>
    %87 = vector.multi_reduction <maximumf>, %86, %cst_33 [2] : vector<1x8x8xf32> to vector<1x8xf32>
    %88 = vector.shape_cast %87 : vector<1x8xf32> to vector<1x8x1xf32>
    %89 = vector.broadcast %88 : vector<1x8x1xf32> to vector<1x8x8xf32>
    %90 = arith.subf %86, %89 : vector<1x8x8xf32>
    %91 = math.exp %90 : vector<1x8x8xf32>
    %cst_34 = arith.constant dense<0.000000e+00> : vector<1x8xf32>
    %92 = vector.multi_reduction <add>, %91, %cst_34 [2] : vector<1x8x8xf32> to vector<1x8xf32>
    %93 = vector.shape_cast %92 : vector<1x8xf32> to vector<1x8x1xf32>
    %94 = tpu.reciprocal %93 : vector<1x8x1xf32> -> vector<1x8x1xf32>
    %95 = vector.broadcast %94 : vector<1x8x1xf32> to vector<1x8x8xf32>
    %96 = arith.mulf %91, %95 : vector<1x8x8xf32>
    "tpu.trace_start"() <{level = 10 : i32, message = "bqk,bkd->bqd"}> : () -> ()
    %cst_35 = arith.constant dense<0.000000e+00> : vector<1x8x8xf32>
    %97 = tpu.matmul %96, %83, %cst_35 {dimension_numbers = #tpu.dot_dimension_numbers<[2], [1], [1], [2], [0, 0, 0, 1, 1, 2], [0], [0]>} : vector<1x8x8xf32>, vector<1x8x8xf32>, vector<1x8x8xf32> -> vector<1x8x8xf32>
    "tpu.trace_stop"() : () -> ()
    %98 = vector.shape_cast %97 : vector<1x8x8xf32> to vector<8x8xf32>
    %c16 = arith.constant 16 : index
    %c0_36 = arith.constant 0 : index
    %99 = vector.load %arg6[%c16, %c0_36] : memref<32x32xf32, #tpu.memory_space<vmem>>, vector<8x32xf32>
    %cst_37 = arith.constant dense<0.000000e+00> : vector<8x32xf32>
    %100 = tpu.matmul %98, %99, %cst_37 {dimension_numbers = #tpu.dot_dimension_numbers<[1], [0], [0], [1], [0, 0, 1, 1], [], []>} : vector<8x8xf32>, vector<8x32xf32>, vector<8x32xf32> -> vector<8x32xf32>
    %101 = arith.addf %77, %100 : vector<8x32xf32>
    %102 = vector.extract_strided_slice %28 {offsets = [0, 24], sizes = [8, 8], strides = [1, 1]} : vector<8x96xf32> to vector<8x8xf32>
    %103 = vector.shape_cast %102 : vector<8x8xf32> to vector<1x8x8xf32>
    %104 = vector.extract_strided_slice %28 {offsets = [0, 56], sizes = [8, 8], strides = [1, 1]} : vector<8x96xf32> to vector<8x8xf32>
    %105 = vector.shape_cast %104 : vector<8x8xf32> to vector<1x8x8xf32>
    %106 = vector.extract_strided_slice %28 {offsets = [0, 88], sizes = [8, 8], strides = [1, 1]} : vector<8x96xf32> to vector<8x8xf32>
    %107 = vector.shape_cast %106 : vector<8x8xf32> to vector<1x8x8xf32>
    "tpu.trace_start"() <{level = 10 : i32, message = "bqd,bkd->bqk"}> : () -> ()
    %cst_38 = arith.constant dense<0.000000e+00> : vector<1x8x8xf32>
    %108 = tpu.matmul %103, %105, %cst_38 {dimension_numbers = #tpu.dot_dimension_numbers<[2], [2], [1], [1], [0, 0, 0, 1, 1, 1], [0], [0]>} : vector<1x8x8xf32>, vector<1x8x8xf32>, vector<1x8x8xf32> -> vector<1x8x8xf32>
    "tpu.trace_stop"() : () -> ()
    %cst_39 = arith.constant 0.353553385 : f32
    %109 = vector.broadcast %cst_39 : f32 to vector<1x8x8xf32>
    %110 = arith.mulf %108, %109 : vector<1x8x8xf32>
    %cst_40 = arith.constant dense<0xFF800000> : vector<1x8xf32>
    %111 = vector.multi_reduction <maximumf>, %110, %cst_40 [2] : vector<1x8x8xf32> to vector<1x8xf32>
    %112 = vector.shape_cast %111 : vector<1x8xf32> to vector<1x8x1xf32>
    %113 = vector.broadcast %112 : vector<1x8x1xf32> to vector<1x8x8xf32>
    %114 = arith.subf %110, %113 : vector<1x8x8xf32>
    %115 = math.exp %114 : vector<1x8x8xf32>
    %cst_41 = arith.constant dense<0.000000e+00> : vector<1x8xf32>
    %116 = vector.multi_reduction <add>, %115, %cst_41 [2] : vector<1x8x8xf32> to vector<1x8xf32>
    %117 = vector.shape_cast %116 : vector<1x8xf32> to vector<1x8x1xf32>
    %118 = tpu.reciprocal %117 : vector<1x8x1xf32> -> vector<1x8x1xf32>
    %119 = vector.broadcast %118 : vector<1x8x1xf32> to vector<1x8x8xf32>
    %120 = arith.mulf %115, %119 : vector<1x8x8xf32>
    "tpu.trace_start"() <{level = 10 : i32, message = "bqk,bkd->bqd"}> : () -> ()
    %cst_42 = arith.constant dense<0.000000e+00> : vector<1x8x8xf32>
    %121 = tpu.matmul %120, %107, %cst_42 {dimension_numbers = #tpu.dot_dimension_numbers<[2], [1], [1], [2], [0, 0, 0, 1, 1, 2], [0], [0]>} : vector<1x8x8xf32>, vector<1x8x8xf32>, vector<1x8x8xf32> -> vector<1x8x8xf32>
    "tpu.trace_stop"() : () -> ()
    %122 = vector.shape_cast %121 : vector<1x8x8xf32> to vector<8x8xf32>
    %c24 = arith.constant 24 : index
    %c0_43 = arith.constant 0 : index
    %123 = vector.load %arg6[%c24, %c0_43] : memref<32x32xf32, #tpu.memory_space<vmem>>, vector<8x32xf32>
    %cst_44 = arith.constant dense<0.000000e+00> : vector<8x32xf32>
    %124 = tpu.matmul %122, %123, %cst_44 {dimension_numbers = #tpu.dot_dimension_numbers<[1], [0], [0], [1], [0, 0, 1, 1], [], []>} : vector<8x8xf32>, vector<8x32xf32>, vector<8x32xf32> -> vector<8x32xf32>
    %125 = arith.addf %101, %124 : vector<8x32xf32>
    %c0_45 = arith.constant 0 : index
    %c0_46 = arith.constant 0 : index
    %126 = vector.load %arg7[%c0_45, %c0_46] : memref<1x32xf32, #tpu.memory_space<vmem>>, vector<1x32xf32>
    %127 = vector.broadcast %126 : vector<1x32xf32> to vector<8x32xf32>
    %128 = arith.addf %125, %127 : vector<8x32xf32>
    %129 = arith.addf %128, %1 : vector<8x32xf32>
    %c0_47 = arith.constant 0 : index
    %c0_48 = arith.constant 0 : index
    %130 = vector.load %arg8[%c0_47, %c0_48] : memref<1x32xf32, #tpu.memory_space<vmem>>, vector<1x32xf32>
    %c0_49 = arith.constant 0 : index
    %c0_50 = arith.constant 0 : index
    %131 = vector.load %arg9[%c0_49, %c0_50] : memref<1x32xf32, #tpu.memory_space<vmem>>, vector<1x32xf32>
    %cst_51 = arith.constant dense<0.000000e+00> : vector<8xf32>
    %132 = vector.multi_reduction <add>, %129, %cst_51 [1] : vector<8x32xf32> to vector<8xf32>
    %133 = vector.shape_cast %132 : vector<8xf32> to vector<8x1xf32>
    %cst_52 = arith.constant 3.200000e+01 : f32
    %134 = vector.broadcast %cst_52 : f32 to vector<8x1xf32>
    %135 = arith.divf %133, %134 : vector<8x1xf32>
    %136 = vector.broadcast %135 : vector<8x1xf32> to vector<8x32xf32>
    %137 = arith.subf %129, %136 : vector<8x32xf32>
    %138 = arith.mulf %137, %137 : vector<8x32xf32>
    %cst_53 = arith.constant dense<0.000000e+00> : vector<8xf32>
    %139 = vector.multi_reduction <add>, %138, %cst_53 [1] : vector<8x32xf32> to vector<8xf32>
    %140 = vector.shape_cast %139 : vector<8xf32> to vector<8x1xf32>
    %cst_54 = arith.constant 3.200000e+01 : f32
    %141 = vector.broadcast %cst_54 : f32 to vector<8x1xf32>
    %142 = arith.divf %140, %141 : vector<8x1xf32>
    %cst_55 = arith.constant 9.99999997E-7 : f32
    %143 = vector.broadcast %cst_55 : f32 to vector<8x1xf32>
    %144 = arith.addf %142, %143 : vector<8x1xf32>
    %145 = math.rsqrt %144 : vector<8x1xf32>
    %146 = vector.broadcast %145 : vector<8x1xf32> to vector<8x32xf32>
    %147 = arith.mulf %137, %146 : vector<8x32xf32>
    %148 = vector.broadcast %130 : vector<1x32xf32> to vector<8x32xf32>
    %149 = arith.mulf %147, %148 : vector<8x32xf32>
    %150 = vector.broadcast %131 : vector<1x32xf32> to vector<8x32xf32>
    %151 = arith.addf %149, %150 : vector<8x32xf32>
    %cst_56 = arith.constant 0.000000e+00 : f32
    %152 = vector.broadcast %cst_56 : f32 to vector<8x32xf32>
    %c0_57 = arith.constant 0 : index
    %c0_58 = arith.constant 0 : index
    %153 = vector.load %arg10[%c0_57, %c0_58] : memref<32x256xf32, #tpu.memory_space<vmem>>, vector<32x256xf32>
    %cst_59 = arith.constant dense<0.000000e+00> : vector<8x256xf32>
    %154 = tpu.matmul %151, %153, %cst_59 {dimension_numbers = #tpu.dot_dimension_numbers<[1], [0], [0], [1], [0, 0, 1, 1], [], []>} : vector<8x32xf32>, vector<32x256xf32>, vector<8x256xf32> -> vector<8x256xf32>
    %c0_60 = arith.constant 0 : index
    %c0_61 = arith.constant 0 : index
    %155 = vector.load %arg11[%c0_60, %c0_61] : memref<1x256xf32, #tpu.memory_space<vmem>>, vector<1x256xf32>
    %156 = vector.broadcast %155 : vector<1x256xf32> to vector<8x256xf32>
    %157 = arith.addf %154, %156 : vector<8x256xf32>
    %cst_62 = arith.constant 5.000000e-01 : f32
    %158 = vector.broadcast %cst_62 : f32 to vector<8x256xf32>
    %159 = arith.mulf %158, %157 : vector<8x256xf32>
    %cst_63 = arith.constant 0.707106769 : f32
    %160 = vector.broadcast %cst_63 : f32 to vector<8x256xf32>
    %161 = arith.mulf %157, %160 : vector<8x256xf32>
    %162 = math.erf %161 : vector<8x256xf32>
    %cst_64 = arith.constant 1.000000e+00 : f32
    %163 = vector.broadcast %cst_64 : f32 to vector<8x256xf32>
    %164 = arith.addf %163, %162 : vector<8x256xf32>
    %165 = arith.mulf %159, %164 : vector<8x256xf32>
    %c0_65 = arith.constant 0 : index
    %c0_66 = arith.constant 0 : index
    %166 = vector.load %arg12[%c0_65, %c0_66] : memref<256x32xf32, #tpu.memory_space<vmem>>, vector<256x32xf32>
    %cst_67 = arith.constant dense<0.000000e+00> : vector<8x32xf32>
    %167 = tpu.matmul %165, %166, %cst_67 {dimension_numbers = #tpu.dot_dimension_numbers<[1], [0], [0], [1], [0, 0, 1, 1], [], []>} : vector<8x256xf32>, vector<256x32xf32>, vector<8x32xf32> -> vector<8x32xf32>
    %168 = arith.addf %152, %167 : vector<8x32xf32>
    %c0_68 = arith.constant 0 : index
    %c0_69 = arith.constant 0 : index
    %169 = vector.load %arg13[%c0_68, %c0_69] : memref<1x32xf32, #tpu.memory_space<vmem>>, vector<1x32xf32>
    %170 = vector.broadcast %169 : vector<1x32xf32> to vector<8x32xf32>
    %171 = arith.addf %168, %170 : vector<8x32xf32>
    %172 = arith.addf %129, %171 : vector<8x32xf32>
    %173 = vector.shape_cast %172 : vector<8x32xf32> to vector<1x8x32xf32>
    %c0_70 = arith.constant 0 : index
    %c0_71 = arith.constant 0 : index
    %c0_72 = arith.constant 0 : index
    %174 = vector.load %arg14[%c0_70, %c0_71, %c0_72] : memref<1x8x32xf32, #tpu.memory_space<vmem>>, vector<1x8x32xf32>
    tpu.vector_store %arg14[%c0_70, %c0_71, %c0_72], %173 {strides = array<i32>} : memref<1x8x32xf32, #tpu.memory_space<vmem>>, vector<1x8x32xf32>,
    return
  }
  func.func @transform_0(%arg0: i32) -> (i32, i32, i32) {
    %c0_i32 = arith.constant 0 : i32
    %c0_i32_0 = arith.constant 0 : i32
    %c0_i32_1 = arith.constant 0 : i32
    return %arg0, %c0_i32, %c0_i32_0 : i32, i32, i32
  }
  func.func @transform_1(%arg0: i32) -> (i32, i32) {
    %c0_i32 = arith.constant 0 : i32
    %c0_i32_0 = arith.constant 0 : i32
    %c0_i32_1 = arith.constant 0 : i32
    return %c0_i32, %c0_i32_0 : i32, i32
  }
  func.func @transform_2(%arg0: i32) -> (i32, i32) {
    %c0_i32 = arith.constant 0 : i32
    %c0_i32_0 = arith.constant 0 : i32
    %c0_i32_1 = arith.constant 0 : i32
    return %c0_i32, %c0_i32_0 : i32, i32
  }
  func.func @transform_3(%arg0: i32) -> (i32, i32) {
    %c0_i32 = arith.constant 0 : i32
    %c0_i32_0 = arith.constant 0 : i32
    %c0_i32_1 = arith.constant 0 : i32
    return %c0_i32, %c0_i32_0 : i32, i32
  }
  func.func @transform_4(%arg0: i32) -> (i32, i32) {
    %c0_i32 = arith.constant 0 : i32
    %c0_i32_0 = arith.constant 0 : i32
    %c0_i32_1 = arith.constant 0 : i32
    return %c0_i32, %c0_i32_0 : i32, i32
  }
  func.func @transform_5(%arg0: i32) -> (i32, i32) {
    %c0_i32 = arith.constant 0 : i32
    %c0_i32_0 = arith.constant 0 : i32
    %c0_i32_1 = arith.constant 0 : i32
    return %c0_i32, %c0_i32_0 : i32, i32
  }
  func.func @transform_6(%arg0: i32) -> (i32, i32) {
    %c0_i32 = arith.constant 0 : i32
    %c0_i32_0 = arith.constant 0 : i32
    %c0_i32_1 = arith.constant 0 : i32
    return %c0_i32, %c0_i32_0 : i32, i32
  }
  func.func @transform_7(%arg0: i32) -> (i32, i32) {
    %c0_i32 = arith.constant 0 : i32
    %c0_i32_0 = arith.constant 0 : i32
    %c0_i32_1 = arith.constant 0 : i32
    return %c0_i32, %c0_i32_0 : i32, i32
  }
  func.func @transform_8(%arg0: i32) -> (i32, i32) {
    %c0_i32 = arith.constant 0 : i32
    %c0_i32_0 = arith.constant 0 : i32
    %c0_i32_1 = arith.constant 0 : i32
    return %c0_i32, %c0_i32_0 : i32, i32
  }
  func.func @transform_9(%arg0: i32) -> (i32, i32) {
    %c0_i32 = arith.constant 0 : i32
    %c0_i32_0 = arith.constant 0 : i32
    %c0_i32_1 = arith.constant 0 : i32
    return %c0_i32, %c0_i32_0 : i32, i32
  }
  func.func @transform_10(%arg0: i32) -> (i32, i32) {
    %c0_i32 = arith.constant 0 : i32
    %c0_i32_0 = arith.constant 0 : i32
    %c0_i32_1 = arith.constant 0 : i32
    return %c0_i32, %c0_i32_0 : i32, i32
  }
  func.func @transform_11(%arg0: i32) -> (i32, i32) {
    %c0_i32 = arith.constant 0 : i32
    %c0_i32_0 = arith.constant 0 : i32
    %c0_i32_1 = arith.constant 0 : i32
    return %c0_i32, %c0_i32_0 : i32, i32
  }
  func.func @transform_12(%arg0: i32) -> (i32, i32) {
    %c0_i32 = arith.constant 0 : i32
    %c0_i32_0 = arith.constant 0 : i32
    %c0_i32_1 = arith.constant 0 : i32
    return %c0_i32, %c0_i32_0 : i32, i32
  }
  func.func @transform_13(%arg0: i32) -> (i32, i32, i32) {
    %c0_i32 = arith.constant 0 : i32
    %c0_i32_0 = arith.constant 0 : i32
    %c0_i32_1 = arith.constant 0 : i32
    return %arg0, %c0_i32, %c0_i32_0 : i32, i32, i32
  }
}

module attributes {stable_mosaic.version = 11 : i64} {
  func.func @_encoder_block_kernel(%arg0: i32, %arg1: memref<1x8x32xf32, #tpu.memory_space<vmem>>, %arg2: memref<1x32xf32, #tpu.memory_space<vmem>>, %arg3: memref<1x32xf32, #tpu.memory_space<vmem>>, %arg4: memref<32x96xf32, #tpu.memory_space<vmem>>, %arg5: memref<1x96xf32, #tpu.memory_space<vmem>>, %arg6: memref<32x32xf32, #tpu.memory_space<vmem>>, %arg7: memref<1x32xf32, #tpu.memory_space<vmem>>, %arg8: memref<1x32xf32, #tpu.memory_space<vmem>>, %arg9: memref<1x32xf32, #tpu.memory_space<vmem>>, %arg10: memref<32x256xf32, #tpu.memory_space<vmem>>, %arg11: memref<1x256xf32, #tpu.memory_space<vmem>>, %arg12: memref<256x32xf32, #tpu.memory_space<vmem>>, %arg13: memref<1x32xf32, #tpu.memory_space<vmem>>, %arg14: memref<1x8x32xf32, #tpu.memory_space<vmem>>) attributes {dimension_semantics = [#tpu.dimension_semantics<parallel>], iteration_bounds = array<i64: 2>, scalar_prefetch = 0 : i64, scratch_operands = 0 : i64, tpu.core_type = #tpu.core_type<tc>, window_params = [{transform_indices = @transform_0, window_bounds = array<i64: 1, 8, 32>}, {pipeline_mode = #tpu.pipeline_mode<synchronous>, transform_indices = @transform_1, window_bounds = array<i64: 1, 32>}, {pipeline_mode = #tpu.pipeline_mode<synchronous>, transform_indices = @transform_2, window_bounds = array<i64: 1, 32>}, {pipeline_mode = #tpu.pipeline_mode<synchronous>, transform_indices = @transform_3, window_bounds = array<i64: 32, 96>}, {pipeline_mode = #tpu.pipeline_mode<synchronous>, transform_indices = @transform_4, window_bounds = array<i64: 1, 96>}, {pipeline_mode = #tpu.pipeline_mode<synchronous>, transform_indices = @transform_5, window_bounds = array<i64: 32, 32>}, {pipeline_mode = #tpu.pipeline_mode<synchronous>, transform_indices = @transform_6, window_bounds = array<i64: 1, 32>}, {pipeline_mode = #tpu.pipeline_mode<synchronous>, transform_indices = @transform_7, window_bounds = array<i64: 1, 32>}, {pipeline_mode = #tpu.pipeline_mode<synchronous>, transform_indices = @transform_8, window_bounds = array<i64: 1, 32>}, {pipeline_mode = #tpu.pipeline_mode<synchronous>, transform_indices = @transform_9, window_bounds = array<i64: 32, 256>}, {pipeline_mode = #tpu.pipeline_mode<synchronous>, transform_indices = @transform_10, window_bounds = array<i64: 1, 256>}, {pipeline_mode = #tpu.pipeline_mode<synchronous>, transform_indices = @transform_11, window_bounds = array<i64: 256, 32>}, {pipeline_mode = #tpu.pipeline_mode<synchronous>, transform_indices = @transform_12, window_bounds = array<i64: 1, 32>}, {transform_indices = @transform_13, window_bounds = array<i64: 1, 8, 32>}]} {
    %c0 = arith.constant 0 : index
    %c0_0 = arith.constant 0 : index
    %c0_1 = arith.constant 0 : index
    %0 = vector.load %arg1[%c0, %c0_0, %c0_1] : memref<1x8x32xf32, #tpu.memory_space<vmem>>, vector<1x8x32xf32>
    %1 = vector.shape_cast %0 : vector<1x8x32xf32> to vector<8x32xf32>
    %c0_2 = arith.constant 0 : index
    %c0_3 = arith.constant 0 : index
    %2 = vector.load %arg2[%c0_2, %c0_3] : memref<1x32xf32, #tpu.memory_space<vmem>>, vector<1x32xf32>
    %c0_4 = arith.constant 0 : index
    %c0_5 = arith.constant 0 : index
    %3 = vector.load %arg3[%c0_4, %c0_5] : memref<1x32xf32, #tpu.memory_space<vmem>>, vector<1x32xf32>
    %cst = arith.constant dense<0.000000e+00> : vector<8xf32>
    %4 = vector.multi_reduction <add>, %1, %cst [1] : vector<8x32xf32> to vector<8xf32>
    %5 = vector.shape_cast %4 : vector<8xf32> to vector<8x1xf32>
    %cst_6 = arith.constant 3.200000e+01 : f32
    %6 = vector.broadcast %cst_6 : f32 to vector<8x1xf32>
    %7 = arith.divf %5, %6 : vector<8x1xf32>
    %8 = vector.broadcast %7 : vector<8x1xf32> to vector<8x32xf32>
    %9 = arith.subf %1, %8 : vector<8x32xf32>
    %10 = arith.mulf %9, %9 : vector<8x32xf32>
    %cst_7 = arith.constant dense<0.000000e+00> : vector<8xf32>
    %11 = vector.multi_reduction <add>, %10, %cst_7 [1] : vector<8x32xf32> to vector<8xf32>
    %12 = vector.shape_cast %11 : vector<8xf32> to vector<8x1xf32>
    %cst_8 = arith.constant 3.200000e+01 : f32
    %13 = vector.broadcast %cst_8 : f32 to vector<8x1xf32>
    %14 = arith.divf %12, %13 : vector<8x1xf32>
    %cst_9 = arith.constant 9.99999997E-7 : f32
    %15 = vector.broadcast %cst_9 : f32 to vector<8x1xf32>
    %16 = arith.addf %14, %15 : vector<8x1xf32>
    %17 = math.rsqrt %16 : vector<8x1xf32>
    %18 = vector.broadcast %17 : vector<8x1xf32> to vector<8x32xf32>
    %19 = arith.mulf %9, %18 : vector<8x32xf32>
    %20 = vector.broadcast %2 : vector<1x32xf32> to vector<8x32xf32>
    %21 = arith.mulf %19, %20 : vector<8x32xf32>
    %22 = vector.broadcast %3 : vector<1x32xf32> to vector<8x32xf32>
    %23 = arith.addf %21, %22 : vector<8x32xf32>
    %c0_10 = arith.constant 0 : index
    %c0_11 = arith.constant 0 : index
    %24 = vector.load %arg4[%c0_10, %c0_11] : memref<32x96xf32, #tpu.memory_space<vmem>>, vector<32x96xf32>
    %cst_12 = arith.constant dense<0.000000e+00> : vector<8x96xf32>
    %25 = tpu.matmul %23, %24, %cst_12 {dimension_numbers = #tpu.dot_dimension_numbers<[1], [0], [0], [1], [0, 0, 1, 1], [], []>} : vector<8x32xf32>, vector<32x96xf32>, vector<8x96xf32> -> vector<8x96xf32>
    %c0_13 = arith.constant 0 : index
    %c0_14 = arith.constant 0 : index
    %26 = vector.load %arg5[%c0_13, %c0_14] : memref<1x96xf32, #tpu.memory_space<vmem>>, vector<1x96xf32>
    %27 = vector.broadcast %26 : vector<1x96xf32> to vector<8x96xf32>
    %28 = arith.addf %25, %27 : vector<8x96xf32>
    %cst_15 = arith.constant 0.000000e+00 : f32
    %29 = vector.broadcast %cst_15 : f32 to vector<8x32xf32>
    %30 = vector.extract_strided_slice %28 {offsets = [0, 0], sizes = [8, 8], strides = [1, 1]} : vector<8x96xf32> to vector<8x8xf32>
    %31 = vector.shape_cast %30 : vector<8x8xf32> to vector<1x8x8xf32>
    %32 = vector.extract_strided_slice %28 {offsets = [0, 32], sizes = [8, 8], strides = [1, 1]} : vector<8x96xf32> to vector<8x8xf32>
    %33 = vector.shape_cast %32 : vector<8x8xf32> to vector<1x8x8xf32>
    %34 = vector.extract_strided_slice %28 {offsets = [0, 64], sizes = [8, 8], strides = [1, 1]} : vector<8x96xf32> to vector<8x8xf32>
    %35 = vector.shape_cast %34 : vector<8x8xf32> to vector<1x8x8xf32>
    "tpu.trace_start"() <{level = 10 : i32, message = "bqd,bkd->bqk"}> : () -> ()
    %cst_16 = arith.constant dense<0.000000e+00> : vector<1x8x8xf32>
    %36 = tpu.matmul %31, %33, %cst_16 {dimension_numbers = #tpu.dot_dimension_numbers<[2], [2], [1], [1], [0, 0, 0, 1, 1, 1], [0], [0]>} : vector<1x8x8xf32>, vector<1x8x8xf32>, vector<1x8x8xf32> -> vector<1x8x8xf32>
    "tpu.trace_stop"() : () -> ()
    %cst_17 = arith.constant 0.353553385 : f32
    %37 = vector.broadcast %cst_17 : f32 to vector<1x8x8xf32>
    %38 = arith.mulf %36, %37 : vector<1x8x8xf32>
    %cst_18 = arith.constant dense<0xFF800000> : vector<1x8xf32>
    %39 = vector.multi_reduction <maximumf>, %38, %cst_18 [2] : vector<1x8x8xf32> to vector<1x8xf32>
    %40 = vector.shape_cast %39 : vector<1x8xf32> to vector<1x8x1xf32>
    %41 = vector.broadcast %40 : vector<1x8x1xf32> to vector<1x8x8xf32>
    %42 = arith.subf %38, %41 : vector<1x8x8xf32>
    %43 = math.exp %42 : vector<1x8x8xf32>
    %cst_19 = arith.constant dense<0.000000e+00> : vector<1x8xf32>
    %44 = vector.multi_reduction <add>, %43, %cst_19 [2] : vector<1x8x8xf32> to vector<1x8xf32>
    %45 = vector.shape_cast %44 : vector<1x8xf32> to vector<1x8x1xf32>
    %46 = tpu.reciprocal %45 : vector<1x8x1xf32> -> vector<1x8x1xf32>
    %47 = vector.broadcast %46 : vector<1x8x1xf32> to vector<1x8x8xf32>
    %48 = arith.mulf %43, %47 : vector<1x8x8xf32>
    "tpu.trace_start"() <{level = 10 : i32, message = "bqk,bkd->bqd"}> : () -> ()
    %cst_20 = arith.constant dense<0.000000e+00> : vector<1x8x8xf32>
    %49 = tpu.matmul %48, %35, %cst_20 {dimension_numbers = #tpu.dot_dimension_numbers<[2], [1], [1], [2], [0, 0, 0, 1, 1, 2], [0], [0]>} : vector<1x8x8xf32>, vector<1x8x8xf32>, vector<1x8x8xf32> -> vector<1x8x8xf32>
    "tpu.trace_stop"() : () -> ()
    %50 = vector.shape_cast %49 : vector<1x8x8xf32> to vector<8x8xf32>
    %c0_21 = arith.constant 0 : index
    %c0_22 = arith.constant 0 : index
    %51 = vector.load %arg6[%c0_21, %c0_22] : memref<32x32xf32, #tpu.memory_space<vmem>>, vector<8x32xf32>
    %cst_23 = arith.constant dense<0.000000e+00> : vector<8x32xf32>
    %52 = tpu.matmul %50, %51, %cst_23 {dimension_numbers = #tpu.dot_dimension_numbers<[1], [0], [0], [1], [0, 0, 1, 1], [], []>} : vector<8x8xf32>, vector<8x32xf32>, vector<8x32xf32> -> vector<8x32xf32>
    %53 = arith.addf %29, %52 : vector<8x32xf32>
    %54 = vector.extract_strided_slice %28 {offsets = [0, 8], sizes = [8, 8], strides = [1, 1]} : vector<8x96xf32> to vector<8x8xf32>
    %55 = vector.shape_cast %54 : vector<8x8xf32> to vector<1x8x8xf32>
    %56 = vector.extract_strided_slice %28 {offsets = [0, 40], sizes = [8, 8], strides = [1, 1]} : vector<8x96xf32> to vector<8x8xf32>
    %57 = vector.shape_cast %56 : vector<8x8xf32> to vector<1x8x8xf32>
    %58 = vector.extract_strided_slice %28 {offsets = [0, 72], sizes = [8, 8], strides = [1, 1]} : vector<8x96xf32> to vector<8x8xf32>
    %59 = vector.shape_cast %58 : vector<8x8xf32> to vector<1x8x8xf32>
    "tpu.trace_start"() <{level = 10 : i32, message = "bqd,bkd->bqk"}> : () -> ()
    %cst_24 = arith.constant dense<0.000000e+00> : vector<1x8x8xf32>
    %60 = tpu.matmul %55, %57, %cst_24 {dimension_numbers = #tpu.dot_dimension_numbers<[2], [2], [1], [1], [0, 0, 0, 1, 1, 1], [0], [0]>} : vector<1x8x8xf32>, vector<1x8x8xf32>, vector<1x8x8xf32> -> vector<1x8x8xf32>
    "tpu.trace_stop"() : () -> ()
    %cst_25 = arith.constant 0.353553385 : f32
    %61 = vector.broadcast %cst_25 : f32 to vector<1x8x8xf32>
    %62 = arith.mulf %60, %61 : vector<1x8x8xf32>
    %cst_26 = arith.constant dense<0xFF800000> : vector<1x8xf32>
    %63 = vector.multi_reduction <maximumf>, %62, %cst_26 [2] : vector<1x8x8xf32> to vector<1x8xf32>
    %64 = vector.shape_cast %63 : vector<1x8xf32> to vector<1x8x1xf32>
    %65 = vector.broadcast %64 : vector<1x8x1xf32> to vector<1x8x8xf32>
    %66 = arith.subf %62, %65 : vector<1x8x8xf32>
    %67 = math.exp %66 : vector<1x8x8xf32>
    %cst_27 = arith.constant dense<0.000000e+00> : vector<1x8xf32>
    %68 = vector.multi_reduction <add>, %67, %cst_27 [2] : vector<1x8x8xf32> to vector<1x8xf32>
    %69 = vector.shape_cast %68 : vector<1x8xf32> to vector<1x8x1xf32>
    %70 = tpu.reciprocal %69 : vector<1x8x1xf32> -> vector<1x8x1xf32>
    %71 = vector.broadcast %70 : vector<1x8x1xf32> to vector<1x8x8xf32>
    %72 = arith.mulf %67, %71 : vector<1x8x8xf32>
    "tpu.trace_start"() <{level = 10 : i32, message = "bqk,bkd->bqd"}> : () -> ()
    %cst_28 = arith.constant dense<0.000000e+00> : vector<1x8x8xf32>
    %73 = tpu.matmul %72, %59, %cst_28 {dimension_numbers = #tpu.dot_dimension_numbers<[2], [1], [1], [2], [0, 0, 0, 1, 1, 2], [0], [0]>} : vector<1x8x8xf32>, vector<1x8x8xf32>, vector<1x8x8xf32> -> vector<1x8x8xf32>
    "tpu.trace_stop"() : () -> ()
    %74 = vector.shape_cast %73 : vector<1x8x8xf32> to vector<8x8xf32>
    %c8 = arith.constant 8 : index
    %c0_29 = arith.constant 0 : index
    %75 = vector.load %arg6[%c8, %c0_29] : memref<32x32xf32, #tpu.memory_space<vmem>>, vector<8x32xf32>
    %cst_30 = arith.constant dense<0.000000e+00> : vector<8x32xf32>
    %76 = tpu.matmul %74, %75, %cst_30 {dimension_numbers = #tpu.dot_dimension_numbers<[1], [0], [0], [1], [0, 0, 1, 1], [], []>} : vector<8x8xf32>, vector<8x32xf32>, vector<8x32xf32> -> vector<8x32xf32>
    %77 = arith.addf %53, %76 : vector<8x32xf32>
    %78 = vector.extract_strided_slice %28 {offsets = [0, 16], sizes = [8, 8], strides = [1, 1]} : vector<8x96xf32> to vector<8x8xf32>
    %79 = vector.shape_cast %78 : vector<8x8xf32> to vector<1x8x8xf32>
    %80 = vector.extract_strided_slice %28 {offsets = [0, 48], sizes = [8, 8], strides = [1, 1]} : vector<8x96xf32> to vector<8x8xf32>
    %81 = vector.shape_cast %80 : vector<8x8xf32> to vector<1x8x8xf32>
    %82 = vector.extract_strided_slice %28 {offsets = [0, 80], sizes = [8, 8], strides = [1, 1]} : vector<8x96xf32> to vector<8x8xf32>
    %83 = vector.shape_cast %82 : vector<8x8xf32> to vector<1x8x8xf32>
    "tpu.trace_start"() <{level = 10 : i32, message = "bqd,bkd->bqk"}> : () -> ()
    %cst_31 = arith.constant dense<0.000000e+00> : vector<1x8x8xf32>
    %84 = tpu.matmul %79, %81, %cst_31 {dimension_numbers = #tpu.dot_dimension_numbers<[2], [2], [1], [1], [0, 0, 0, 1, 1, 1], [0], [0]>} : vector<1x8x8xf32>, vector<1x8x8xf32>, vector<1x8x8xf32> -> vector<1x8x8xf32>
    "tpu.trace_stop"() : () -> ()
    %cst_32 = arith.constant 0.353553385 : f32
    %85 = vector.broadcast %cst_32 : f32 to vector<1x8x8xf32>
    %86 = arith.mulf %84, %85 : vector<1x8x8xf32>
    %cst_33 = arith.constant dense<0xFF800000> : vector<1x8xf32>
    %87 = vector.multi_reduction <maximumf>, %86, %cst_33 [2] : vector<1x8x8xf32> to vector<1x8xf32>
    %88 = vector.shape_cast %87 : vector<1x8xf32> to vector<1x8x1xf32>
    %89 = vector.broadcast %88 : vector<1x8x1xf32> to vector<1x8x8xf32>
    %90 = arith.subf %86, %89 : vector<1x8x8xf32>
    %91 = math.exp %90 : vector<1x8x8xf32>
    %cst_34 = arith.constant dense<0.000000e+00> : vector<1x8xf32>
    %92 = vector.multi_reduction <add>, %91, %cst_34 [2] : vector<1x8x8xf32> to vector<1x8xf32>
    %93 = vector.shape_cast %92 : vector<1x8xf32> to vector<1x8x1xf32>
    %94 = tpu.reciprocal %93 : vector<1x8x1xf32> -> vector<1x8x1xf32>
    %95 = vector.broadcast %94 : vector<1x8x1xf32> to vector<1x8x8xf32>
    %96 = arith.mulf %91, %95 : vector<1x8x8xf32>
    "tpu.trace_start"() <{level = 10 : i32, message = "bqk,bkd->bqd"}> : () -> ()
    %cst_35 = arith.constant dense<0.000000e+00> : vector<1x8x8xf32>
    %97 = tpu.matmul %96, %83, %cst_35 {dimension_numbers = #tpu.dot_dimension_numbers<[2], [1], [1], [2], [0, 0, 0, 1, 1, 2], [0], [0]>} : vector<1x8x8xf32>, vector<1x8x8xf32>, vector<1x8x8xf32> -> vector<1x8x8xf32>
    "tpu.trace_stop"() : () -> ()
    %98 = vector.shape_cast %97 : vector<1x8x8xf32> to vector<8x8xf32>
    %c16 = arith.constant 16 : index
    %c0_36 = arith.constant 0 : index
    %99 = vector.load %arg6[%c16, %c0_36] : memref<32x32xf32, #tpu.memory_space<vmem>>, vector<8x32xf32>
    %cst_37 = arith.constant dense<0.000000e+00> : vector<8x32xf32>
    %100 = tpu.matmul %98, %99, %cst_37 {dimension_numbers = #tpu.dot_dimension_numbers<[1], [0], [0], [1], [0, 0, 1, 1], [], []>} : vector<8x8xf32>, vector<8x32xf32>, vector<8x32xf32> -> vector<8x32xf32>
    %101 = arith.addf %77, %100 : vector<8x32xf32>
    %102 = vector.extract_strided_slice %28 {offsets = [0, 24], sizes = [8, 8], strides = [1, 1]} : vector<8x96xf32> to vector<8x8xf32>
    %103 = vector.shape_cast %102 : vector<8x8xf32> to vector<1x8x8xf32>
    %104 = vector.extract_strided_slice %28 {offsets = [0, 56], sizes = [8, 8], strides = [1, 1]} : vector<8x96xf32> to vector<8x8xf32>
    %105 = vector.shape_cast %104 : vector<8x8xf32> to vector<1x8x8xf32>
    %106 = vector.extract_strided_slice %28 {offsets = [0, 88], sizes = [8, 8], strides = [1, 1]} : vector<8x96xf32> to vector<8x8xf32>
    %107 = vector.shape_cast %106 : vector<8x8xf32> to vector<1x8x8xf32>
    "tpu.trace_start"() <{level = 10 : i32, message = "bqd,bkd->bqk"}> : () -> ()
    %cst_38 = arith.constant dense<0.000000e+00> : vector<1x8x8xf32>
    %108 = tpu.matmul %103, %105, %cst_38 {dimension_numbers = #tpu.dot_dimension_numbers<[2], [2], [1], [1], [0, 0, 0, 1, 1, 1], [0], [0]>} : vector<1x8x8xf32>, vector<1x8x8xf32>, vector<1x8x8xf32> -> vector<1x8x8xf32>
    "tpu.trace_stop"() : () -> ()
    %cst_39 = arith.constant 0.353553385 : f32
    %109 = vector.broadcast %cst_39 : f32 to vector<1x8x8xf32>
    %110 = arith.mulf %108, %109 : vector<1x8x8xf32>
    %cst_40 = arith.constant dense<0xFF800000> : vector<1x8xf32>
    %111 = vector.multi_reduction <maximumf>, %110, %cst_40 [2] : vector<1x8x8xf32> to vector<1x8xf32>
    %112 = vector.shape_cast %111 : vector<1x8xf32> to vector<1x8x1xf32>
    %113 = vector.broadcast %112 : vector<1x8x1xf32> to vector<1x8x8xf32>
    %114 = arith.subf %110, %113 : vector<1x8x8xf32>
    %115 = math.exp %114 : vector<1x8x8xf32>
    %cst_41 = arith.constant dense<0.000000e+00> : vector<1x8xf32>
    %116 = vector.multi_reduction <add>, %115, %cst_41 [2] : vector<1x8x8xf32> to vector<1x8xf32>
    %117 = vector.shape_cast %116 : vector<1x8xf32> to vector<1x8x1xf32>
    %118 = tpu.reciprocal %117 : vector<1x8x1xf32> -> vector<1x8x1xf32>
    %119 = vector.broadcast %118 : vector<1x8x1xf32> to vector<1x8x8xf32>
    %120 = arith.mulf %115, %119 : vector<1x8x8xf32>
    "tpu.trace_start"() <{level = 10 : i32, message = "bqk,bkd->bqd"}> : () -> ()
    %cst_42 = arith.constant dense<0.000000e+00> : vector<1x8x8xf32>
    %121 = tpu.matmul %120, %107, %cst_42 {dimension_numbers = #tpu.dot_dimension_numbers<[2], [1], [1], [2], [0, 0, 0, 1, 1, 2], [0], [0]>} : vector<1x8x8xf32>, vector<1x8x8xf32>, vector<1x8x8xf32> -> vector<1x8x8xf32>
    "tpu.trace_stop"() : () -> ()
    %122 = vector.shape_cast %121 : vector<1x8x8xf32> to vector<8x8xf32>
    %c24 = arith.constant 24 : index
    %c0_43 = arith.constant 0 : index
    %123 = vector.load %arg6[%c24, %c0_43] : memref<32x32xf32, #tpu.memory_space<vmem>>, vector<8x32xf32>
    %cst_44 = arith.constant dense<0.000000e+00> : vector<8x32xf32>
    %124 = tpu.matmul %122, %123, %cst_44 {dimension_numbers = #tpu.dot_dimension_numbers<[1], [0], [0], [1], [0, 0, 1, 1], [], []>} : vector<8x8xf32>, vector<8x32xf32>, vector<8x32xf32> -> vector<8x32xf32>
    %125 = arith.addf %101, %124 : vector<8x32xf32>
    %c0_45 = arith.constant 0 : index
    %c0_46 = arith.constant 0 : index
    %126 = vector.load %arg7[%c0_45, %c0_46] : memref<1x32xf32, #tpu.memory_space<vmem>>, vector<1x32xf32>
    %127 = vector.broadcast %126 : vector<1x32xf32> to vector<8x32xf32>
    %128 = arith.addf %125, %127 : vector<8x32xf32>
    %129 = arith.addf %128, %1 : vector<8x32xf32>
    %c0_47 = arith.constant 0 : index
    %c0_48 = arith.constant 0 : index
    %130 = vector.load %arg8[%c0_47, %c0_48] : memref<1x32xf32, #tpu.memory_space<vmem>>, vector<1x32xf32>
    %c0_49 = arith.constant 0 : index
    %c0_50 = arith.constant 0 : index
    %131 = vector.load %arg9[%c0_49, %c0_50] : memref<1x32xf32, #tpu.memory_space<vmem>>, vector<1x32xf32>
    %cst_51 = arith.constant dense<0.000000e+00> : vector<8xf32>
    %132 = vector.multi_reduction <add>, %129, %cst_51 [1] : vector<8x32xf32> to vector<8xf32>
    %133 = vector.shape_cast %132 : vector<8xf32> to vector<8x1xf32>
    %cst_52 = arith.constant 3.200000e+01 : f32
    %134 = vector.broadcast %cst_52 : f32 to vector<8x1xf32>
    %135 = arith.divf %133, %134 : vector<8x1xf32>
    %136 = vector.broadcast %135 : vector<8x1xf32> to vector<8x32xf32>
    %137 = arith.subf %129, %136 : vector<8x32xf32>
    %138 = arith.mulf %137, %137 : vector<8x32xf32>
    %cst_53 = arith.constant dense<0.000000e+00> : vector<8xf32>
    %139 = vector.multi_reduction <add>, %138, %cst_53 [1] : vector<8x32xf32> to vector<8xf32>
    %140 = vector.shape_cast %139 : vector<8xf32> to vector<8x1xf32>
    %cst_54 = arith.constant 3.200000e+01 : f32
    %141 = vector.broadcast %cst_54 : f32 to vector<8x1xf32>
    %142 = arith.divf %140, %141 : vector<8x1xf32>
    %cst_55 = arith.constant 9.99999997E-7 : f32
    %143 = vector.broadcast %cst_55 : f32 to vector<8x1xf32>
    %144 = arith.addf %142, %143 : vector<8x1xf32>
    %145 = math.rsqrt %144 : vector<8x1xf32>
    %146 = vector.broadcast %145 : vector<8x1xf32> to vector<8x32xf32>
    %147 = arith.mulf %137, %146 : vector<8x32xf32>
    %148 = vector.broadcast %130 : vector<1x32xf32> to vector<8x32xf32>
    %149 = arith.mulf %147, %148 : vector<8x32xf32>
    %150 = vector.broadcast %131 : vector<1x32xf32> to vector<8x32xf32>
    %151 = arith.addf %149, %150 : vector<8x32xf32>
    %cst_56 = arith.constant 0.000000e+00 : f32
    %152 = vector.broadcast %cst_56 : f32 to vector<8x32xf32>
    %c0_57 = arith.constant 0 : index
    %c0_58 = arith.constant 0 : index
    %153 = vector.load %arg10[%c0_57, %c0_58] : memref<32x256xf32, #tpu.memory_space<vmem>>, vector<32x256xf32>
    %cst_59 = arith.constant dense<0.000000e+00> : vector<8x256xf32>
    %154 = tpu.matmul %151, %153, %cst_59 {dimension_numbers = #tpu.dot_dimension_numbers<[1], [0], [0], [1], [0, 0, 1, 1], [], []>} : vector<8x32xf32>, vector<32x256xf32>, vector<8x256xf32> -> vector<8x256xf32>
    %c0_60 = arith.constant 0 : index
    %c0_61 = arith.constant 0 : index
    %155 = vector.load %arg11[%c0_60, %c0_61] : memref<1x256xf32, #tpu.memory_space<vmem>>, vector<1x256xf32>
    %156 = vector.broadcast %155 : vector<1x256xf32> to vector<8x256xf32>
    %157 = arith.addf %154, %156 : vector<8x256xf32>
    %cst_62 = arith.constant 5.000000e-01 : f32
    %158 = vector.broadcast %cst_62 : f32 to vector<8x256xf32>
    %159 = arith.mulf %158, %157 : vector<8x256xf32>
    %cst_63 = arith.constant 0.707106769 : f32
    %160 = vector.broadcast %cst_63 : f32 to vector<8x256xf32>
    %161 = arith.mulf %157, %160 : vector<8x256xf32>
    %162 = math.erf %161 : vector<8x256xf32>
    %cst_64 = arith.constant 1.000000e+00 : f32
    %163 = vector.broadcast %cst_64 : f32 to vector<8x256xf32>
    %164 = arith.addf %163, %162 : vector<8x256xf32>
    %165 = arith.mulf %159, %164 : vector<8x256xf32>
    %c0_65 = arith.constant 0 : index
    %c0_66 = arith.constant 0 : index
    %166 = vector.load %arg12[%c0_65, %c0_66] : memref<256x32xf32, #tpu.memory_space<vmem>>, vector<256x32xf32>
    %cst_67 = arith.constant dense<0.000000e+00> : vector<8x32xf32>
    %167 = tpu.matmul %165, %166, %cst_67 {dimension_numbers = #tpu.dot_dimension_numbers<[1], [0], [0], [1], [0, 0, 1, 1], [], []>} : vector<8x256xf32>, vector<256x32xf32>, vector<8x32xf32> -> vector<8x32xf32>
    %168 = arith.addf %152, %167 : vector<8x32xf32>
    %c0_68 = arith.constant 0 : index
    %c0_69 = arith.constant 0 : index
    %169 = vector.load %arg13[%c0_68, %c0_69] : memref<1x32xf32, #tpu.memory_space<vmem>>, vector<1x32xf32>
    %170 = vector.broadcast %169 : vector<1x32xf32> to vector<8x32xf32>
    %171 = arith.addf %168, %170 : vector<8x32xf32>
    %172 = arith.addf %129, %171 : vector<8x32xf32>
    %173 = vector.shape_cast %172 : vector<8x32xf32> to vector<1x8x32xf32>
    %c0_70 = arith.constant 0 : index
    %c0_71 = arith.constant 0 : index
    %c0_72 = arith.constant 0 : index
    %174 = vector.load %arg14[%c0_70, %c0_71, %c0_72] : memref<1x8x32xf32, #tpu.memory_space<vmem>>, vector<1x8x32xf32>
    tpu.vector_store %arg14[%c0_70, %c0_71, %c0_72], %173 {strides = array<i32>} : memref<1x8x32xf32, #tpu.memory_space<vmem>>, vector<1x8x32xf32>,
    return
  }
  func.func @transform_0(%arg0: i32) -> (i32, i32, i32) {
    %c0_i32 = arith.constant 0 : i32
    %c0_i32_0 = arith.constant 0 : i32
    %c0_i32_1 = arith.constant 0 : i32
    return %arg0, %c0_i32, %c0_i32_0 : i32, i32, i32
  }
  func.func @transform_1(%arg0: i32) -> (i32, i32) {
    %c0_i32 = arith.constant 0 : i32
    %c0_i32_0 = arith.constant 0 : i32
    %c0_i32_1 = arith.constant 0 : i32
    return %c0_i32, %c0_i32_0 : i32, i32
  }
  func.func @transform_2(%arg0: i32) -> (i32, i32) {
    %c0_i32 = arith.constant 0 : i32
    %c0_i32_0 = arith.constant 0 : i32
    %c0_i32_1 = arith.constant 0 : i32
    return %c0_i32, %c0_i32_0 : i32, i32
  }
  func.func @transform_3(%arg0: i32) -> (i32, i32) {
    %c0_i32 = arith.constant 0 : i32
    %c0_i32_0 = arith.constant 0 : i32
    %c0_i32_1 = arith.constant 0 : i32
    return %c0_i32, %c0_i32_0 : i32, i32
  }
  func.func @transform_4(%arg0: i32) -> (i32, i32) {
    %c0_i32 = arith.constant 0 : i32
    %c0_i32_0 = arith.constant 0 : i32
    %c0_i32_1 = arith.constant 0 : i32
    return %c0_i32, %c0_i32_0 : i32, i32
  }
  func.func @transform_5(%arg0: i32) -> (i32, i32) {
    %c0_i32 = arith.constant 0 : i32
    %c0_i32_0 = arith.constant 0 : i32
    %c0_i32_1 = arith.constant 0 : i32
    return %c0_i32, %c0_i32_0 : i32, i32
  }
  func.func @transform_6(%arg0: i32) -> (i32, i32) {
    %c0_i32 = arith.constant 0 : i32
    %c0_i32_0 = arith.constant 0 : i32
    %c0_i32_1 = arith.constant 0 : i32
    return %c0_i32, %c0_i32_0 : i32, i32
  }
  func.func @transform_7(%arg0: i32) -> (i32, i32) {
    %c0_i32 = arith.constant 0 : i32
    %c0_i32_0 = arith.constant 0 : i32
    %c0_i32_1 = arith.constant 0 : i32
    return %c0_i32, %c0_i32_0 : i32, i32
  }
  func.func @transform_8(%arg0: i32) -> (i32, i32) {
    %c0_i32 = arith.constant 0 : i32
    %c0_i32_0 = arith.constant 0 : i32
    %c0_i32_1 = arith.constant 0 : i32
    return %c0_i32, %c0_i32_0 : i32, i32
  }
  func.func @transform_9(%arg0: i32) -> (i32, i32) {
    %c0_i32 = arith.constant 0 : i32
    %c0_i32_0 = arith.constant 0 : i32
    %c0_i32_1 = arith.constant 0 : i32
    return %c0_i32, %c0_i32_0 : i32, i32
  }
  func.func @transform_10(%arg0: i32) -> (i32, i32) {
    %c0_i32 = arith.constant 0 : i32
    %c0_i32_0 = arith.constant 0 : i32
    %c0_i32_1 = arith.constant 0 : i32
    return %c0_i32, %c0_i32_0 : i32, i32
  }
  func.func @transform_11(%arg0: i32) -> (i32, i32) {
    %c0_i32 = arith.constant 0 : i32
    %c0_i32_0 = arith.constant 0 : i32
    %c0_i32_1 = arith.constant 0 : i32
    return %c0_i32, %c0_i32_0 : i32, i32
  }
  func.func @transform_12(%arg0: i32) -> (i32, i32) {
    %c0_i32 = arith.constant 0 : i32
    %c0_i32_0 = arith.constant 0 : i32
    %c0_i32_1 = arith.constant 0 : i32
    return %c0_i32, %c0_i32_0 : i32, i32
  }
  func.func @transform_13(%arg0: i32) -> (i32, i32, i32) {
    %c0_i32 = arith.constant 0 : i32
    %c0_i32_0 = arith.constant 0 : i32
    %c0_i32_1 = arith.constant 0 : i32
    return %arg0, %c0_i32, %c0_i32_0 : i32, i32, i32
  }
}

</mosaic_0001>

<bundles_post_ra>
// kernel: tpu_custom_call.1
= control target key start
LH: loop header
LB: loop body
LE: loop exit
PB: predicated region body
PF: predicated region fallthrough
CT: control target
= control target key end

     0   :  { %s2588_s0 = inlined_call_operand.vmem [shape: f32[2,8,32], index: 0, kind: input, shape index: {}]   ;;  %s2589_s1 = inlined_call_operand.vmem [shape: f32[1,32], index: 1, kind: input, shape index: {}]   ;;  %s2590_s2 = inlined_call_operand.vmem [shape: f32[1,32], index: 2, kind: input, shape index: {}]   ;;  %s2591_s3 = inlined_call_operand.vmem [shape: f32[32,96], index: 3, kind: input, shape index: {}]   ;;  %s2592_s4 = inlined_call_operand.vmem [shape: f32[1,96], index: 4, kind: input, shape index: {}]   ;;  %s2593_s5 = inlined_call_operand.vmem [shape: f32[32,32], index: 5, kind: input, shape index: {}]   ;;  %s2594_s6 = inlined_call_operand.vmem [shape: f32[1,32], index: 6, kind: input, shape index: {}]   ;;  %s2595_s7 = inlined_call_operand.vmem [shape: f32[1,32], index: 7, kind: input, shape index: {}]   ;;  %s2596_s8 = inlined_call_operand.vmem [shape: f32[1,32], index: 8, kind: input, shape index: {}]   ;;  %s2597_s9 = inlined_call_operand.vmem [shape: f32[32,256], index: 9, kind: input, shape index: {}]   ;;  %s2598_s10 = inlined_call_operand.vmem [shape: f32[1,256], index: 10, kind: input, shape index: {}]   ;;  %s2599_s11 = inlined_call_operand.vmem [shape: f32[256,32], index: 11, kind: input, shape index: {}]   ;;  %s2600_s12 = inlined_call_operand.vmem [shape: f32[1,32], index: 12, kind: input, shape index: {}]   ;;  %s2601_s13 = inlined_call_operand.hbm [shape: f32[2,8,32], index: 13, kind: output, shape index: {}]  }
   0x1   :  { %2602 = sst [smem:[#allocation5_spill]] %s2588_s0 }
   0x2   :  { %2603 = sst [smem:[#allocation6_spill]] %s2589_s1 }
   0x3   :  { %2604 = sst [smem:[#allocation7_spill]] %s2590_s2 }
   0x4   :  { %2605 = sst [smem:[#allocation8_spill]] %s2591_s3 }
   0x5   :  { %18 = vsyncpa [#allocation3], 0 }
   0x6   :  { %20 = vsyncpa [#allocation3 + $0x1], 0  ;;  %s2232_s25 = smov 0   ;;  %s2234_s26 = smov 0  }
   0x7   :  { %s2236_s27 = smov 0   ;;  %s2238_s28 = smov 0  }
   0x8 LB: > { %s2253_s29 = sadd.s32 4294967295, %s2146_s28   ;;  %s1840_s30 = sadd.s32 4294967294, %s2146_s28   ;;  %s2146_s28 = sphi %s2238_s28, %s2615_s28   ;;  %s2142_s27 = sphi %s2236_s27, %s2614_s27   ;;  %s2138_s26 = sphi %s2234_s26, %s2613_s26   ;;  %s2134_s25 = sphi %s2232_s25, %s2612_s25  }
   0x9   : > { %s2257_s14 = sadd.s32 1, %s2146_s28   ;;  %s311_s15 = sadd.s32 1, %s2142_s27 }
   0xa   : > { %s308_s16 = ssub.s32 %s2146_s28, %s2257_s14  ;;  %p321_p0 = scmp.ne.s32.totalorder %s2142_s27, %s2138_s26 }
   0xb   : > { %p309_p1 = scmp.eq.s32.totalorder %s308_s16, 0  ;;  %p322_p2 = scmp.eq.s32.totalorder %s2253_s29, 1 }
   0xc   : > { %p327_p3 = scmp.ne.s32.totalorder %s2138_s26, %s2134_s25  ;;  %p328_p4 = scmp.eq.s32.totalorder %s1840_s30, 1 }
   0xd   : > { %s2268_s17 = scalar_select %p309_p1, %s2142_s27, %s311_s15  }
   0xe   : > { %p2270_p5 = por %p322_p2, %p321_p0  ;;  %p2274_p6 = por %p328_p4, %p327_p3 }
   0xf   : > { %p1843_p7 = scmp.ge.s32.totalorder %s2146_s28, 1  ;;  %p389_p8 = scmp.lt.s32.totalorder %s2146_s28, 3 }
  0x11   : > { %p390_p9 = pnand %p1843_p7, %p389_p8 }
  0x12   : > { %p432_p10 = scmp.lt.s32.totalorder (!%p390_p9), %s2253_s29, 1  ;;  %s2608_s0 = sld [smem:[#allocation5_spill]] (!%p390_p9) }
  0x13   : > { %393 = sbr.rel (%p390_p9) target bundleno = 4015 (0xfaf), region = 72  ;;  %s2609_s3 = sld [smem:[#allocation8_spill]] (!%p390_p9) }
  0x14   : > { %s2610_s1 = sld [smem:[#allocation6_spill]] (!%p390_p9)  ;;  %s2150_s23 = smov (!%p390_p9), 64  }
  0x15   : > { %s2611_s2 = sld [smem:[#allocation7_spill]] (!%p390_p9)  ;;  %s2152_s30 = smov (!%p390_p9), 88  }
  0x16   : > { %s2153_s15 = smov (!%p390_p9), 120   ;;  %s2155_s22 = smov (!%p390_p9), 80  }
  0x17   : > { %s2158_s16 = smov (!%p390_p9), 72  }
  0x18   : > { %s433_s20 = scalar_select %p432_p10, %s2253_s29, 1  ;;  %vm439_vm0 = vcmask 261120   ;;  %v2148_v8 = vmov 0.0   ;;  %vm2149_vm1 = vmmov 0   ;;  %v1848_v21 = vld [vmem:[%s2592_s4] ss:$0 sm:$0xff] }
  0x19   : > { %v471_v7 = vld [vmem:[%s2609_s3 + $0x18] sm:$0xff]  ;;  %1939 = vmatprep.subr.mxu0 %v2148_v8  ;;  %v470_v9 = vld [vmem:[%s2609_s3 + $0x10] sm:$0xff]  ;;  %1947 = vmatprep.mubr.msk.f32.mxu0 %vm2149_vm1, %v2148_v8  ;;  %v469_v10 = vld [vmem:[%s2609_s3 + $0x8] sm:$0xff]  ;;  %vm555_vm2 = vcmask 64512  }
  0x1a   : > { %s1845_s21 = sshll.u32 %s433_s20, 3  ;;  %1940 = vmatpush3.msra.mxu0 %v471_v7  ;;  %1975 = vmatprep.subr.mxu1 %v2148_v8  ;;  %v468_v11 = vld [vmem:[%s2609_s3] sm:$0xff]  ;;  %v885_v60 = vld [vmem:[%s2593_s5 + $0x8] sm:$0xff]  ;;  %s2159_s20 = smov 104  }
  0x1b   : > { %s435_s24 = scalar_lea.vmem %s2608_s0, %s1845_s21  ;;  %1941 = vmatprep.subr.mxu0 %v2148_v8  ;;  %1977 = vmatprep.mubr.msk.f32.mxu1 %vm2149_vm1, %v2148_v8  ;;  %v1846_v16 = vld [vmem:[%s2610_s1] ss:$0 sm:$0xff]  ;;  %s2154_s21 = smov 56  }
  0x1c   : > { %v2285_v0 = vld [vmem:[%s435_s24] sm:$0xff]  ;;  %1942 = vmatpush3.msra.mxu0 %v470_v9  ;;  %s2151_s24 = smov 96   ;;  %s429_s0 = sand.u32 1, %s2138_s26  }
  0x1d   : > { %v440_v1 = vsel %vm439_vm0, %v2285_v0, 0.0  ;;  %1943 = vmatprep.subr.mxu0 %v2148_v8  ;;  %v1847_v18 = vld [vmem:[%s2611_s2] ss:$0 sm:$0xff]  ;;  %s1844_s1 = sshll.u32 %s429_s0, 3  ;;  %s1768_s2 = scalar_lea.sflag [#allocation3], %s429_s0 }
  0x1e   : > { %441 = vadd.xlane.f32.xlu0 %v440_v1  ;;  %1944 = vmatpush3.msra.mxu0 %v469_v10  ;;  %v718_v41 = vld [vmem:[%s2593_s5] sm:$0xff] }
  0x1f   : > { %1945 = vmatprep.subr.mxu0 %v2148_v8  ;;  %1976 = vmatpush3.msra.mxu1 %v718_v41 }
  0x20   : > { %1946 = vmatpush3.msra.mxu0 %v468_v11  ;;  %1985 = vmatprep.subr.mxu1 %v2148_v8 }
  0x21   : > { %1950 = vmatprep.subr.mxu0 %v2148_v8 }
  0xa7   : > { %v442_v2 = vpop.xlane.xlu0 %441 }
  0xa8   : > { %v444_v3 = vmul.f32 0.03125, %v442_v2 }
  0xaa   : > { %v445_v4 = vsub.f32 %v2285_v0, %v444_v3 }
  0xac   : > { %v446_v5 = vmul.f32 %v445_v4, %v445_v4 }
  0xae   : > { %v447_v6 = vsel %vm439_vm0, %v446_v5, 0.0 }
  0xaf   : > { %448 = vadd.xlane.f32.xlu0 %v447_v6 }
 0x138   : > { %v449_v12 = vpop.xlane.xlu0 %448 }
 0x139   : > { %v450_v13 = vmul.f32 0.03125, %v449_v12 }
 0x13b   : > { %v451_v14 = vadd.f32 1e-06, %v450_v13 }
 0x13d   : > { %2062 = vrsqrt.f32 %v451_v14 }
 0x14a   : > { %v2063_v15 = vpop.eup %2062 }
 0x14b   : > { %v453_v17 = vmul.f32 %v2063_v15, %v445_v4 }
 0x14d   : > { %v460_v19 = vmul.f32 %v1846_v16, %v453_v17 }
 0x14f   : > { %v467_v20 = vadd.f32 %v1847_v18, %v460_v19  ;;  %v1198_v19 = vld [vmem:[%s2593_s5 + $0x10] sm:$0xff] }
 0x151   : > { %1948 = vmatmul.mubr.msk.f32.vlgmr.msra.gmra.mxu0 %vm439_vm0, %v467_v20 }
 0x152   : > { %1952 = vmatprep.mubr.msk.f32.mxu0 %vm2149_vm1, %v2148_v8 }
 0x211   : > { %v548_v22 = vpop.f32.mrf.mxu0 }
 0x212   : > { %v2325_v23 = vadd.f32 %v1848_v21, %v548_v22 }
 0x213   : > { %v1949_v24 = vpop.f32.mrf.mxu0 }
 0x214   : > { %642 = vrot.lane.b32.xlu0 %v2325_v23, %s2150_s23  ;;  %553 = vrot.lane.b32.xlu1 %v2325_v23, %s2151_s24  ;;  %s2156_s23 = smov 112   ;;  %s2157_s24 = smov 48  }
 0x286   : > { %v554_v25 = vpop.permute.xlu1 %553  ;;  %v643_v26 = vpop.permute.xlu0 %642 }
 0x287   : > { %1951 = vmatpush3.xpose.msk.msra.mxu0 %vm555_vm2, %v554_v25 }
 0x288   : > { %1955 = vmatprep.subr.mxu0 %v2148_v8 }
 0x28a   : > { %1953 = vmatmul.mubr.msk.f32.vlgmr.msra.gmra.mxu0 %vm555_vm2, %v2325_v23 }
 0x28b   : > { %1956 = vmatpush3.msra.mxu0 %v643_v26  ;;  %1957 = vmatprep.mubr.msk.f32.mxu0 %vm2149_vm1, %v2148_v8 }
 0x28c   : > { %1960 = vmatprep.subr.mxu0 %v2148_v8 }
 0x34a   : > { %v626_v27 = vpop.f32.mrf.mxu0 }
 0x34b   : > { %v630_v28 = vmul.f32 0.35355338, %v626_v27 }
 0x34c   : > { %v1954_v29 = vpop.f32.mrf.mxu0 }
 0x34d   : > { %v631_v30 = vsel %vm555_vm2, %v630_v28, -inf }
 0x34e   : > { %632 = vmax.xlane.f32.xlu1 %v631_v30 }
 0x3d7   : > { %v633_v31 = vpop.xlane.xlu1 %632 }
 0x3d8   : > { %v634_v32 = vsub.f32 %v630_v28, %v633_v31 }
 0x3da   : > { %v635_v33 = vmul.f32 1.442695, %v634_v32 }
 0x3dc   : > { %2064 = vpow2.f32 %v635_v33  ;;  %v1439_v33 = vld [vmem:[%s2593_s5 + $0x18] sm:$0xff] }
 0x3e9   : > { %v2065_v34 = vpop.eup %2064 }
 0x3ea   : > { %v637_v35 = vsel %vm555_vm2, %v2065_v34, 0.0 }
 0x3eb   : > { %638 = vadd.xlane.f32.xlu0 %v637_v35 }
 0x401   : > { %721 = vrot.lane.b32.xlu0 %v2325_v23, %s2152_s30 }
 0x405   : > { %719 = vrot.lane.b32.xlu0 %v2325_v23, %s2153_s15  ;;  %s2161_s15 = smov [#allocation2]  }
 0x474   : > { %v639_v36 = vpop.xlane.xlu0 %638 }
 0x475   : > { %2066 = vrcp.f32 %v639_v36 }
 0x478   : > { %v722_v38 = vpop.permute.xlu0 %721 }
 0x47c   : > { %v720_v40 = vpop.permute.xlu0 %719 }
 0x482   : > { %v2067_v37 = vpop.eup %2066 }
 0x483   : > { %v641_v39 = vmul.f32 %v2067_v37, %v2065_v34 }
 0x485   : > { %1958 = vmatmul.mubr.msk.f32.vlgmr.msra.gmra.mxu0 %vm555_vm2, %v641_v39 }
 0x486   : > { %1961 = vmatpush3.xpose.msk.msra.mxu0 %vm555_vm2, %v722_v38  ;;  %1962 = vmatprep.mubr.msk.f32.mxu0 %vm2149_vm1, %v2148_v8 }
 0x487   : > { %1965 = vmatprep.subr.mxu0 %v2148_v8 }
 0x489   : > { %1963 = vmatmul.mubr.msk.f32.vlgmr.msra.gmra.mxu0 %vm555_vm2, %v720_v40 }
 0x48a   : > { %1967 = vmatprep.mubr.msk.f32.mxu0 %vm2149_vm1, %v2148_v8 }
 0x545   : > { %v714_v42 = vpop.f32.mrf.mxu0 }
 0x546   : > { %1978 = vmatmul.mubr.msk.f32.vlgmr.msra.gmra.mxu1 %vm555_vm2, %v714_v42 }
 0x547   : > { %v1959_v43 = vpop.f32.mrf.mxu0  ;;  %1987 = vmatprep.mubr.msk.f32.mxu1 %vm2149_vm1, %v2148_v8 }
 0x548   : > { %v1866_v43 = vld [vmem:[%s2594_s6] ss:$0 sm:$0xff] }
 0x549   : > { %v793_v44 = vpop.f32.mrf.mxu0 }
 0x54a   : > { %v797_v45 = vmul.f32 0.35355338, %v793_v44 }
 0x54b   : > { %v1964_v46 = vpop.f32.mrf.mxu0 }
 0x54c   : > { %v798_v47 = vsel %vm555_vm2, %v797_v45, -inf }
 0x54d   : > { %799 = vmax.xlane.f32.xlu1 %v798_v47 }
 0x55e   : > { %809 = vrot.lane.b32.xlu1 %v2325_v23, %s2154_s21  ;;  %s431_s21 = scalar_lea.vmem [#allocation2], %s1844_s1 }
 0x562   : > { %1034 = vrot.lane.b32.xlu1 %v2325_v23, %s2155_s22  ;;  %s1781_s22 = sshll.u32 %s431_s21, 4  ;;  %s1782_s22 = int_to_ptr.vmem [resolvable:$true] %s1781_s22 }
 0x563   : > { %s2086_s3 = scalar_lea.vmem %s1782_s22, 128 }
 0x564   : > { %p2087_p11 = scmp.ne.s32.totalorder %s1782_s22, %s2086_s3 }
 0x566   : > { %1032 = vrot.lane.b32.xlu1 %v2325_v23, %s2156_s23  ;;  %s2160_s23 = smov 40   ;;  %p2088_p12 = pnand %p2087_p11, %p2270_p5 }
 0x568   : > { %p2089_p13 = pneg %p2088_p12 }
 0x5d6   : > { %v800_v48 = vpop.xlane.xlu1 %799 }
 0x5d7   : > { %v801_v49 = vsub.f32 %v797_v45, %v800_v48 }
 0x5d9   : > { %v802_v50 = vmul.f32 1.442695, %v801_v49 }
 0x5da   : > { %v810_v51 = vpop.permute.xlu1 %809 }
 0x5db   : > { %2068 = vpow2.f32 %v802_v50  ;;  %1966 = vmatpush3.msra.mxu0 %v810_v51 }
 0x5dc   : > { %1970 = vmatprep.subr.mxu0 %v2148_v8 }
 0x5de   : > { %v1035_v61 = vpop.permute.xlu1 %1034 }
 0x5e2   : > { %v1033_v1 = vpop.permute.xlu1 %1032 }
 0x5e8   : > { %v2069_v52 = vpop.eup %2068 }
 0x5e9   : > { %v804_v53 = vsel %vm555_vm2, %v2069_v52, 0.0 }
 0x5ea   : > { %805 = vadd.xlane.f32.xlu0 %v804_v53  ;;  %v1559_v53 = vld [vmem:[%s2597_s9 + $0x38] sm:$0xff] }
 0x600   : > { %1122 = vrot.lane.b32.xlu0 %v2325_v23, %s2157_s24 }
 0x606   : > { %v2362_v54 = vpop.f32.mrf.mxu1 }
 0x608   : > { %v1979_v55 = vpop.f32.mrf.mxu1 }
 0x609   : > { %v1556_v55 = vld [vmem:[%s2597_s9 + $0x20] sm:$0xff] }
 0x673   : > { %v806_v56 = vpop.xlane.xlu0 %805 }
 0x674   : > { %2070 = vrcp.f32 %v806_v56  ;;  %v1555_v56 = vld [vmem:[%s2597_s9 + $0x18] sm:$0xff] }
 0x677   : > { %v1123_v57 = vpop.permute.xlu0 %1122 }
 0x678   : > { %1986 = vmatpush3.msra.mxu1 %v1123_v57  ;;  %v1554_v57 = vld [vmem:[%s2597_s9 + $0x10] sm:$0xff] }
 0x679   : > { %1995 = vmatprep.subr.mxu1 %v2148_v8 }
 0x681   : > { %v2071_v58 = vpop.eup %2070 }
 0x682   : > { %v808_v59 = vmul.f32 %v2071_v58, %v2069_v52  ;;  %v1553_v58 = vld [vmem:[%s2597_s9 + $0x8] sm:$0xff] }
 0x684   : > { %1968 = vmatmul.mubr.msk.f32.vlgmr.msra.gmra.mxu0 %vm555_vm2, %v808_v59  ;;  %v1552_v59 = vld [vmem:[%s2597_s9] sm:$0xff] }
 0x685   : > { %1971 = vmatpush3.msra.mxu0 %v885_v60  ;;  %1972 = vmatprep.mubr.msk.f32.mxu0 %vm2149_vm1, %v2148_v8  ;;  %v1687_v60 = vld [vmem:[%s2599_s11 + $0xf8] sm:$0xff] }
 0x686   : > { %1980 = vmatprep.subr.mxu0 %v2148_v8 }
 0x744   : > { %v881_v62 = vpop.f32.mrf.mxu0 }
 0x745   : > { %1973 = vmatmul.mubr.msk.f32.vlgmr.msra.gmra.mxu0 %vm555_vm2, %v881_v62  ;;  %v1686_v62 = vld [vmem:[%s2599_s11 + $0xf0] sm:$0xff] }
 0x746   : > { %1981 = vmatpush3.xpose.msk.msra.mxu0 %vm555_vm2, %v1035_v61  ;;  %v1969_v63 = vpop.f32.mrf.mxu0  ;;  %1982 = vmatprep.mubr.msk.f32.mxu0 %vm2149_vm1, %v2148_v8  ;;  %v1671_v61 = vld [vmem:[%s2599_s11 + $0x78] sm:$0xff] }
 0x747   : > { %1990 = vmatprep.subr.mxu0 %v2148_v8  ;;  %v1670_v63 = vld [vmem:[%s2599_s11 + $0x70] sm:$0xff] }
 0x749   : > { %1983 = vmatmul.mubr.msk.f32.vlgmr.msra.gmra.mxu0 %vm555_vm2, %v1033_v1  ;;  %v1685_v1 = vld [vmem:[%s2599_s11 + $0xe8] sm:$0xff] }
 0x74a   : > { %1992 = vmatprep.mubr.msk.f32.mxu0 %vm2149_vm1, %v2148_v8  ;;  %1991 = vmatpush3.msra.mxu0 %v1198_v19  ;;  %v1681_v19 = vld [vmem:[%s2599_s11 + $0xc8] sm:$0xff] }
 0x74b   : > { %2000 = vmatprep.subr.mxu0 %v2148_v8 }
 0x805   : > { %v955_v2 = vpop.f32.mrf.mxu0 }
 0x806   : > { %v1029_v34 = vadd.f32 %v2362_v54, %v955_v2  ;;  %v1557_v54 = vld [vmem:[%s2597_s9 + $0x28] sm:$0xff] }
 0x807   : > { %v1974_v3 = vpop.f32.mrf.mxu0  ;;  %v1669_v2 = vld [vmem:[%s2599_s11 + $0x68] sm:$0xff] }
 0x809   : > { %v1106_v4 = vpop.f32.mrf.mxu0 }
 0x80a   : > { %v1110_v5 = vmul.f32 0.35355338, %v1106_v4 }
 0x80b   : > { %v1984_v6 = vpop.f32.mrf.mxu0 }
 0x80c   : > { %v1111_v7 = vsel %vm555_vm2, %v1110_v5, -inf }
 0x80d   : > { %1112 = vmax.xlane.f32.xlu1 %v1111_v7  ;;  %v1867_v7 = vld [vmem:[%s2595_s7] ss:$0 sm:$0xff] }
 0x896   : > { %v1113_v9 = vpop.xlane.xlu1 %1112 }
 0x897   : > { %v1114_v10 = vsub.f32 %v1110_v5, %v1113_v9 }
 0x899   : > { %v1115_v11 = vmul.f32 1.442695, %v1114_v10  ;;  %v1868_v10 = vld [vmem:[%s2596_s8] ss:$0 sm:$0xff] }
 0x89b   : > { %2072 = vpow2.f32 %v1115_v11 }
 0x8a8   : > { %v2073_v12 = vpop.eup %2072 }
 0x8a9   : > { %v1117_v13 = vsel %vm555_vm2, %v2073_v12, 0.0 }
 0x8aa   : > { %1118 = vadd.xlane.f32.xlu0 %v1117_v13  ;;  %v1684_v13 = vld [vmem:[%s2599_s11 + $0xe0] sm:$0xff] }
 0x8c0   : > { %1275 = vrot.lane.b32.xlu0 %v2325_v23, %s2158_s16 }
 0x8c4   : > { %1273 = vrot.lane.b32.xlu0 %v2325_v23, %s2159_s20  ;;  %s1872_s20 = sshll.u32 %s2253_s29, 7  ;;  %s2090_s29 = sshll.u32 %s2161_s15, 4  ;;  %s2091_s29 = int_to_ptr.vmem [resolvable:$false] %s2090_s29 }
 0x8c5   : > { %s1779_s30 = scalar_lea.hbm %s2601_s13, %s1872_s20  ;;  %s2092_s1 = scalar_lea.vmem %s2091_s29, 256 }
 0x8c6   : > { %p2093_p0 = scmp.lt.s32.totalorder %s1782_s22, %s2091_s29  ;;  %p2094_p1 = scmp.lt.s32.totalorder %s2092_s1, %s2086_s3 }
 0x8c8   : > { %p2095_p2 = por %p2094_p1, %p2093_p0 }
 0x8ca   : > { %p2096_p3 = pnand %p2095_p2, %p2089_p13 }
 0x933   : > { %v1119_v14 = vpop.xlane.xlu0 %1118 }
 0x934   : > { %2074 = vrcp.f32 %v1119_v14  ;;  %v1668_v14 = vld [vmem:[%s2599_s11 + $0x60] sm:$0xff] }
 0x937   : > { %v1276_v16 = vpop.permute.xlu0 %1275 }
 0x93b   : > { %v1274_v18 = vpop.permute.xlu0 %1273 }
 0x941   : > { %v2075_v15 = vpop.eup %2074 }
 0x942   : > { %v1121_v17 = vmul.f32 %v2075_v15, %v2073_v12  ;;  %v1683_v15 = vld [vmem:[%s2599_s11 + $0xd8] sm:$0xff] }
 0x944   : > { %1988 = vmatmul.mubr.msk.f32.vlgmr.msra.gmra.mxu1 %vm555_vm2, %v1121_v17  ;;  %v1682_v17 = vld [vmem:[%s2599_s11 + $0xd0] sm:$0xff] }
 0x945   : > { %1996 = vmatpush3.xpose.msk.msra.mxu1 %vm555_vm2, %v1276_v16  ;;  %1997 = vmatprep.mubr.msk.f32.mxu1 %vm2149_vm1, %v2148_v8  ;;  %v1667_v16 = vld [vmem:[%s2599_s11 + $0x58] sm:$0xff] }
 0x946   : > { %2005 = vmatprep.subr.mxu1 %v2148_v8 }
 0x948   : > { %1998 = vmatmul.mubr.msk.f32.vlgmr.msra.gmra.mxu1 %vm555_vm2, %v1274_v18  ;;  %v1666_v18 = vld [vmem:[%s2599_s11 + $0x50] sm:$0xff] }
 0x949   : > { %2007 = vmatprep.mubr.msk.f32.mxu1 %vm2149_vm1, %v2148_v8  ;;  %2006 = vmatpush3.msra.mxu1 %v1439_v33  ;;  %v1659_v33 = vld [vmem:[%s2599_s11 + $0x18] sm:$0xff] }
 0x94a   : > { %1904 = vmatprep.subr.mxu1 %v1687_v60  ;;  %v1870_v60 = vld [vmem:[%s2600_s12] ss:$0 sm:$0xff] }
 0xa04   : > { %v1194_v20 = vpop.f32.mrf.mxu1 }
 0xa05   : > { %1993 = vmatmul.mubr.msk.f32.vlgmr.msra.gmra.mxu0 %vm555_vm2, %v1194_v20  ;;  %v1665_v20 = vld [vmem:[%s2599_s11 + $0x48] sm:$0xff] }
 0xa06   : > { %v1989_v21 = vpop.f32.mrf.mxu1  ;;  %2002 = vmatprep.mubr.msk.f32.mxu0 %vm2149_vm1, %v2148_v8 }
 0xa07   : > { %v1680_v21 = vld [vmem:[%s2599_s11 + $0xc0] sm:$0xff] }
 0xa08   : > { %v1347_v22 = vpop.f32.mrf.mxu1 }
 0xa09   : > { %v1351_v24 = vmul.f32 0.35355338, %v1347_v22  ;;  %v1664_v22 = vld [vmem:[%s2599_s11 + $0x40] sm:$0xff] }
 0xa0a   : > { %v1999_v25 = vpop.f32.mrf.mxu1 }
 0xa0b   : > { %v1352_v26 = vsel %vm555_vm2, %v1351_v24, -inf  ;;  %v1663_v25 = vld [vmem:[%s2599_s11 + $0x38] sm:$0xff] }
 0xa0c   : > { %1353 = vmax.xlane.f32.xlu1 %v1352_v26  ;;  %v1678_v26 = vld [vmem:[%s2599_s11 + $0xb0] sm:$0xff] }
 0xa1d   : > { %1363 = vrot.lane.b32.xlu1 %v2325_v23, %s2160_s23 }
 0xa95   : > { %v1354_v27 = vpop.xlane.xlu1 %1353 }
 0xa96   : > { %v1355_v28 = vsub.f32 %v1351_v24, %v1354_v27  ;;  %v1679_v24 = vld [vmem:[%s2599_s11 + $0xb8] sm:$0xff]  ;;  %v1662_v27 = vld [vmem:[%s2599_s11 + $0x30] sm:$0xff] }
 0xa98   : > { %v1356_v29 = vmul.f32 1.442695, %v1355_v28  ;;  %v1677_v28 = vld [vmem:[%s2599_s11 + $0xa8] sm:$0xff] }
 0xa99   : > { %v1364_v30 = vpop.permute.xlu1 %1363 }
 0xa9a   : > { %2076 = vpow2.f32 %v1356_v29  ;;  %2001 = vmatpush3.msra.mxu0 %v1364_v30  ;;  %v1661_v29 = vld [vmem:[%s2599_s11 + $0x28] sm:$0xff]  ;;  %v1676_v30 = vld [vmem:[%s2599_s11 + $0xa0] sm:$0xff] }
 0xa9b   : > { %1599 = vmatprep.subr.mxu0 %v1559_v53 }
 0xaa7   : > { %v2077_v31 = vpop.eup %2076 }
 0xaa8   : > { %v1358_v32 = vsel %vm555_vm2, %v2077_v31, 0.0 }
 0xaa9   : > { %1359 = vadd.xlane.f32.xlu0 %v1358_v32  ;;  %v1675_v32 = vld [vmem:[%s2599_s11 + $0x98] sm:$0xff] }
 0xac5   : > { %v1268_v35 = vpop.f32.mrf.mxu0 }
 0xac6   : > { %v1272_v36 = vadd.f32 %v1268_v35, %v1029_v34  ;;  %v1674_v34 = vld [vmem:[%s2599_s11 + $0x90] sm:$0xff] }
 0xac7   : > { %v1994_v23 = vpop.f32.mrf.mxu0  ;;  %v1658_v35 = vld [vmem:[%s2599_s11 + $0x10] sm:$0xff] }
 0xac8   : > { %v1657_v23 = vld [vmem:[%s2599_s11 + $0x8] sm:$0xff] }
 0xb32   : > { %v1360_v37 = vpop.xlane.xlu0 %1359 }
 0xb33   : > { %2078 = vrcp.f32 %v1360_v37  ;;  %v1672_v37 = vld [vmem:[%s2599_s11 + $0x80] sm:$0xff] }
 0xb40   : > { %v2079_v38 = vpop.eup %2078 }
 0xb41   : > { %v1362_v39 = vmul.f32 %v2079_v38, %v2077_v31  ;;  %v1660_v31 = vld [vmem:[%s2599_s11 + $0x20] sm:$0xff] }
 0xb42   : > { %v1656_v38 = vld [vmem:[%s2599_s11] sm:$0xff] }
 0xb43   : > { %2003 = vmatmul.mubr.msk.f32.vlgmr.msra.gmra.mxu0 %vm555_vm2, %v1362_v39  ;;  %v1562_v39 = vlaneseq }
 0xb44   : > { %1639 = vmatprep.mubr.f32.mxu0 %v2148_v8 }
 0xc03   : > { %v1435_v40 = vpop.f32.mrf.mxu0 }
 0xc04   : > { %2008 = vmatmul.mubr.msk.f32.vlgmr.msra.gmra.mxu1 %vm555_vm2, %v1435_v40  ;;  %v1563_v40 = vshrl.u32 %v1562_v39, 7 }
 0xc05   : > { %v2004_v41 = vpop.f32.mrf.mxu0  ;;  %1905 = vmatpush3.msra.mxu1 %v1671_v61 }
 0xc06   : > { %1906 = vmatprep.subr.mxu1 %v1686_v62  ;;  %v1564_v41 = vsub.s32 0, %v1563_v40 }
 0xc07   : > { %1907 = vmatpush3.msra.mxu1 %v1670_v63 }
 0xc08   : > { %1908 = vmatprep.subr.mxu1 %v1685_v1 }
 0xc09   : > { %1909 = vmatpush3.msra.mxu1 %v1669_v2 }
 0xc0a   : > { %1910 = vmatprep.subr.mxu1 %v1684_v13 }
 0xc0b   : > { %1911 = vmatpush3.msra.mxu1 %v1668_v14 }
 0xc0c   : > { %1912 = vmatprep.subr.mxu1 %v1683_v15 }
 0xc0d   : > { %1913 = vmatpush3.msra.mxu1 %v1667_v16 }
 0xc0e   : > { %1914 = vmatprep.subr.mxu1 %v1682_v17 }
 0xc0f   : > { %1915 = vmatpush3.msra.mxu1 %v1666_v18 }
 0xc10   : > { %1916 = vmatprep.subr.mxu1 %v1681_v19 }
 0xc11   : > { %1917 = vmatpush3.msra.mxu1 %v1665_v20 }
 0xc12   : > { %1918 = vmatprep.subr.mxu1 %v1680_v21 }
 0xc13   : > { %1919 = vmatpush3.msra.mxu1 %v1664_v22 }
 0xc14   : > { %1920 = vmatprep.subr.mxu1 %v1679_v24 }
 0xc15   : > { %1921 = vmatpush3.msra.mxu1 %v1663_v25 }
 0xc16   : > { %1922 = vmatprep.subr.mxu1 %v1678_v26 }
 0xc17   : > { %1923 = vmatpush3.msra.mxu1 %v1662_v27 }
 0xc18   : > { %1924 = vmatprep.subr.mxu1 %v1677_v28 }
 0xc19   : > { %1925 = vmatpush3.msra.mxu1 %v1661_v29 }
 0xc1a   : > { %1926 = vmatprep.subr.mxu1 %v1676_v30 }
 0xc1b   : > { %1927 = vmatpush3.msra.mxu1 %v1660_v31 }
 0xc1c   : > { %1928 = vmatprep.subr.mxu1 %v1675_v32 }
 0xc1d   : > { %1929 = vmatpush3.msra.mxu1 %v1659_v33 }
 0xc1e   : > { %1930 = vmatprep.subr.mxu1 %v1674_v34 }
 0xc1f   : > { %1931 = vmatpush3.msra.mxu1 %v1658_v35 }
 0xcc4   : > { %v1509_v42 = vpop.f32.mrf.mxu1 }
 0xcc5   : > { %v1513_v44 = vadd.f32 %v1509_v42, %v1272_v36  ;;  %v1673_v36 = vld [vmem:[%s2599_s11 + $0x88] sm:$0xff]  ;;  %v1560_v42 = vld [vmem:[%s2598_s10] sm:$0x3] }
 0xcc6   : > { %v2009_v45 = vpop.f32.mrf.mxu1  ;;  %1932 = vmatprep.subr.mxu1 %v1673_v36 }
 0xcc7   : > { %v1521_v46 = vadd.f32 %v1866_v43, %v1513_v44  ;;  %1933 = vmatpush3.msra.mxu1 %v1657_v23  ;;  %v1568_v43 = vsub.s32 1, %v1563_v40  ;;  %v1565_v44 = vrot.slane %v1560_v42, %v1564_v41 }
 0xcc8   : > { %1934 = vmatprep.subr.mxu1 %v1672_v37 }
 0xcc9   : > { %v2413_v47 = vadd.f32 %v1521_v46, %v2285_v0  ;;  %v1558_v0 = vld [vmem:[%s2597_s9 + $0x30] sm:$0xff]  ;;  %1935 = vmatpush3.msra.mxu1 %v1656_v38  ;;  %v1569_v45 = vrot.slane %v1560_v42, %v1568_v43 }
 0xcca   : > { %1600 = vmatpush1.msra.mxu0 %v1558_v0 }
 0xccb   : > { %v1525_v48 = vsel %vm439_vm0, %v2413_v47, 0.0  ;;  %1601 = vmatprep.subr.mxu0 %v1557_v54 }
 0xccc   : > { %1526 = vadd.xlane.f32.xlu1 %v1525_v48  ;;  %1602 = vmatpush1.msra.mxu0 %v1556_v55 }
 0xccd   : > { %1603 = vmatprep.subr.mxu0 %v1555_v56 }
 0xcce   : > { %1604 = vmatpush1.msra.mxu0 %v1554_v57 }
 0xccf   : > { %1605 = vmatprep.subr.mxu0 %v1553_v58 }
 0xcd0   : > { %1606 = vmatpush1.msra.mxu0 %v1552_v59 }
 0xd55   : > { %v1527_v8 = vpop.xlane.xlu1 %1526 }
 0xd56   : > { %v1528_v49 = vmul.f32 0.03125, %v1527_v8 }
 0xd58   : > { %v1529_v50 = vsub.f32 %v2413_v47, %v1528_v49 }
 0xd5a   : > { %v1530_v51 = vmul.f32 %v1529_v50, %v1529_v50 }
 0xd5c   : > { %v1531_v52 = vsel %vm439_vm0, %v1530_v51, 0.0 }
 0xd5d   : > { %1532 = vadd.xlane.f32.xlu0 %v1531_v52 }
 0xde6   : > { %v1533_v3 = vpop.xlane.xlu0 %1532 }
 0xde7   : > { %v1534_v4 = vmul.f32 0.03125, %v1533_v3 }
 0xde9   : > { %v1535_v5 = vadd.f32 1e-06, %v1534_v4 }
 0xdeb   : > { %2080 = vrsqrt.f32 %v1535_v5 }
 0xdf8   : > { %v2081_v6 = vpop.eup %2080 }
 0xdf9   : > { %v1537_v9 = vmul.f32 %v2081_v6, %v1529_v50 }
 0xdfb   : > { %v1544_v11 = vmul.f32 %v1867_v7, %v1537_v9 }
 0xdfd   : > { %v1551_v12 = vadd.f32 %v1868_v10, %v1544_v11 }
 0xdff   : > { %1869 = vmatmul.mubr.msk.f32.vlgmr.msra.gmra.mxu0 %vm439_vm0, %v1551_v12 }
 0xebf   : > { %v1641_v46 = vpop.f32.mrf.mxu0 }
 0xec0   : > { %v1642_v48 = vadd.f32 %v1641_v46, %v1565_v44 }
 0xec1   : > { %v1643_v8 = vpop.f32.mrf.mxu0 }
 0xec2   : > { %v1648_v49 = vmul.f32 0.70710677, %v1642_v48  ;;  %v1644_v50 = vadd.f32 %v1643_v8, %v1569_v45  ;;  %v1646_v56 = vmul.f32 0.5, %v1642_v48 }
 0xec4   : > { %2082 = verf.f32 %v1648_v49  ;;  %v1649_v51 = vmul.f32 0.70710677, %v1644_v50  ;;  %v1647_v54 = vmul.f32 0.5, %v1644_v50 }
 0xec6   : > { %2084 = verf.f32 %v1649_v51 }
 0xed1   : > { %v2083_v52 = vpop.eup %2082 }
 0xed2   : > { %v1652_v0 = vadd.f32 1.0, %v2083_v52 }
 0xed3   : > { %v2085_v53 = vpop.eup %2084 }
 0xed4   : > { %v1653_v55 = vadd.f32 1.0, %v2085_v53  ;;  %v1654_v58 = vmul.f32 %v1652_v0, %v1646_v56 }
 0xed6   : > { %v1655_v57 = vmul.f32 %v1653_v55, %v1647_v54 }
 0xed8   : > { %1759 = vmatprep.mubr.f32.mxu1 %v1655_v57 }
 0xed9   : > { %1760 = vmatmul.mubr.f32.vlgmr.msra.gmra.mxu1 %v1654_v58 }
 0xf99   : > { %v1936_v59 = vpop.f32.mrf.mxu1 }
 0xf9b   : > { %v1937_v61 = vpop.f32.mrf.mxu1 }
 0xf9c   : > { %v1938_v62 = vadd.f32 %v1937_v61, %v1936_v59 }
 0xf9e   : > { %v1762_v63 = vadd.f32 %v1938_v62, %v1870_v60 }
 0xfa0   : > { %v1765_v1 = vadd.f32 %v1762_v63, %v2413_v47 }
 0xfa2   : > { %1766 = vst.msk [vmem:[%s431_s21] sm:$0xff] %vm439_vm0, %v1765_v1 }
 0xfa3   : > { %2099 = shalt.err (!%p2096_p3)
}
 0xfa4   : > { %s2100_s16 = scalar_lea.hbm %s1779_s30, 128  ;;  %s2104_s21 = scalar_lea.hbm %s2601_s13, 256 }
 0xfa5   : > { %p2101_p4 = scmp.ne.s32.totalorder %s1779_s30, %s2100_s16  ;;  %p2105_p9 = scmp.lt.s32.totalorder %s1779_s30, %s2601_s13 }
 0xfa6   : > { %p2106_p10 = scmp.lt.s32.totalorder %s2104_s21, %s2100_s16 }
 0xfa7   : > { %p2102_p7 = pnand %p2101_p4, %p2270_p5 }
 0xfa8   : > { %p2107_p11 = por %p2106_p10, %p2105_p9 }
 0xfa9   : > { %p2103_p8 = pneg %p2102_p7 }
 0xfab   : > { %p2108_p12 = pnand %p2107_p11, %p2103_p8 }
 0xfad   : > { %2111 = shalt.err (!%p2108_p12)
}
 0xfae   : > { %2010 = dma.vmem_to_hbm [thread:$0]  (%p2270_p5), %s1782_s22, 128, %s1779_s30, %s1768_s2  }
 0xfaf PF: > { %p2016_p13 = scmp.ge.s32.totalorder %s2146_s28, 2  ;;  %s1793_s3 = sand.u32 1, %s2134_s25  }
 0xfb0   : > { %s1794_s15 = scalar_lea.sflag [#allocation3], %s1793_s3 }
 0xfb1   : > { %p2013_p0 = pnand %p2016_p13, %p2274_p6 }
 0xfb3   : > { %p2014_p1 = pneg %p2013_p0 }
 0xfb5   : > { %2129 = dma.done.wait (%p2014_p1), %s1794_s15, 128  }
 0xfb6   : > { %2131 = vsyncadd (%p2014_p1), %s1794_s15, 4294967168  ;;  %p23_p2 = scmp.ge.s32.totalorder %s2257_s14, 4   ;;  %s2612_s25 = smov %s2138_s26 }
 0xfb7   : > { %s2613_s26 = smov %s2142_s27  ;;  %s2614_s27 = smov %s2268_s17 }
 0xfb8   : > { %s2615_s28 = smov %s2257_s14  ;;  %25 = sbr.rel (!%p23_p2) target bundleno = 8 (0x8), region = 107 }
 0xfbd   :  { %1799 = vsyncpa [#allocation3], 1 }
 0xfbe   :  { %1801 = vsyncpa [#allocation3 + $0x1], 1 }

// kernel: tpu_custom_call.1
= control target key start
LH: loop header
LB: loop body
LE: loop exit
PB: predicated region body
PF: predicated region fallthrough
CT: control target
= control target key end

     0   :  { %s2588_s0 = inlined_call_operand.vmem [shape: f32[2,8,32], index: 0, kind: input, shape index: {}]   ;;  %s2589_s1 = inlined_call_operand.vmem [shape: f32[1,32], index: 1, kind: input, shape index: {}]   ;;  %s2590_s2 = inlined_call_operand.vmem [shape: f32[1,32], index: 2, kind: input, shape index: {}]   ;;  %s2591_s3 = inlined_call_operand.vmem [shape: f32[32,96], index: 3, kind: input, shape index: {}]   ;;  %s2592_s4 = inlined_call_operand.vmem [shape: f32[1,96], index: 4, kind: input, shape index: {}]   ;;  %s2593_s5 = inlined_call_operand.vmem [shape: f32[32,32], index: 5, kind: input, shape index: {}]   ;;  %s2594_s6 = inlined_call_operand.vmem [shape: f32[1,32], index: 6, kind: input, shape index: {}]   ;;  %s2595_s7 = inlined_call_operand.vmem [shape: f32[1,32], index: 7, kind: input, shape index: {}]   ;;  %s2596_s8 = inlined_call_operand.vmem [shape: f32[1,32], index: 8, kind: input, shape index: {}]   ;;  %s2597_s9 = inlined_call_operand.vmem [shape: f32[32,256], index: 9, kind: input, shape index: {}]   ;;  %s2598_s10 = inlined_call_operand.vmem [shape: f32[1,256], index: 10, kind: input, shape index: {}]   ;;  %s2599_s11 = inlined_call_operand.vmem [shape: f32[256,32], index: 11, kind: input, shape index: {}]   ;;  %s2600_s12 = inlined_call_operand.vmem [shape: f32[1,32], index: 12, kind: input, shape index: {}]   ;;  %s2601_s13 = inlined_call_operand.hbm [shape: f32[2,8,32], index: 13, kind: output, shape index: {}]  }
   0x1   :  { %2602 = sst [smem:[#allocation5_spill]] %s2588_s0 }
   0x2   :  { %2603 = sst [smem:[#allocation6_spill]] %s2589_s1 }
   0x3   :  { %2604 = sst [smem:[#allocation7_spill]] %s2590_s2 }
   0x4   :  { %2605 = sst [smem:[#allocation8_spill]] %s2591_s3 }
   0x5   :  { %18 = vsyncpa [#allocation3], 0 }
   0x6   :  { %20 = vsyncpa [#allocation3 + $0x1], 0  ;;  %s2232_s25 = smov 0   ;;  %s2234_s26 = smov 0  }
   0x7   :  { %s2236_s27 = smov 0   ;;  %s2238_s28 = smov 0  }
   0x8 LB: > { %s2253_s29 = sadd.s32 4294967295, %s2146_s28   ;;  %s1840_s30 = sadd.s32 4294967294, %s2146_s28   ;;  %s2146_s28 = sphi %s2238_s28, %s2615_s28   ;;  %s2142_s27 = sphi %s2236_s27, %s2614_s27   ;;  %s2138_s26 = sphi %s2234_s26, %s2613_s26   ;;  %s2134_s25 = sphi %s2232_s25, %s2612_s25  }
   0x9   : > { %s2257_s14 = sadd.s32 1, %s2146_s28   ;;  %s311_s15 = sadd.s32 1, %s2142_s27 }
   0xa   : > { %s308_s16 = ssub.s32 %s2146_s28, %s2257_s14  ;;  %p321_p0 = scmp.ne.s32.totalorder %s2142_s27, %s2138_s26 }
   0xb   : > { %p309_p1 = scmp.eq.s32.totalorder %s308_s16, 0  ;;  %p322_p2 = scmp.eq.s32.totalorder %s2253_s29, 1 }
   0xc   : > { %p327_p3 = scmp.ne.s32.totalorder %s2138_s26, %s2134_s25  ;;  %p328_p4 = scmp.eq.s32.totalorder %s1840_s30, 1 }
   0xd   : > { %s2268_s17 = scalar_select %p309_p1, %s2142_s27, %s311_s15  }
   0xe   : > { %p2270_p5 = por %p322_p2, %p321_p0  ;;  %p2274_p6 = por %p328_p4, %p327_p3 }
   0xf   : > { %p1843_p7 = scmp.ge.s32.totalorder %s2146_s28, 1  ;;  %p389_p8 = scmp.lt.s32.totalorder %s2146_s28, 3 }
  0x11   : > { %p390_p9 = pnand %p1843_p7, %p389_p8 }
  0x12   : > { %p432_p10 = scmp.lt.s32.totalorder (!%p390_p9), %s2253_s29, 1  ;;  %s2608_s0 = sld [smem:[#allocation5_spill]] (!%p390_p9) }
  0x13   : > { %393 = sbr.rel (%p390_p9) target bundleno = 4015 (0xfaf), region = 72  ;;  %s2609_s3 = sld [smem:[#allocation8_spill]] (!%p390_p9) }
  0x14   : > { %s2610_s1 = sld [smem:[#allocation6_spill]] (!%p390_p9)  ;;  %s2150_s23 = smov (!%p390_p9), 64  }
  0x15   : > { %s2611_s2 = sld [smem:[#allocation7_spill]] (!%p390_p9)  ;;  %s2152_s30 = smov (!%p390_p9), 88  }
  0x16   : > { %s2153_s15 = smov (!%p390_p9), 120   ;;  %s2155_s22 = smov (!%p390_p9), 80  }
  0x17   : > { %s2158_s16 = smov (!%p390_p9), 72  }
  0x18   : > { %s433_s20 = scalar_select %p432_p10, %s2253_s29, 1  ;;  %vm439_vm0 = vcmask 261120   ;;  %v2148_v8 = vmov 0.0   ;;  %vm2149_vm1 = vmmov 0   ;;  %v1848_v21 = vld [vmem:[%s2592_s4] ss:$0 sm:$0xff] }
  0x19   : > { %v471_v7 = vld [vmem:[%s2609_s3 + $0x18] sm:$0xff]  ;;  %1939 = vmatprep.subr.mxu0 %v2148_v8  ;;  %v470_v9 = vld [vmem:[%s2609_s3 + $0x10] sm:$0xff]  ;;  %1947 = vmatprep.mubr.msk.f32.mxu0 %vm2149_vm1, %v2148_v8  ;;  %v469_v10 = vld [vmem:[%s2609_s3 + $0x8] sm:$0xff]  ;;  %vm555_vm2 = vcmask 64512  }
  0x1a   : > { %s1845_s21 = sshll.u32 %s433_s20, 3  ;;  %1940 = vmatpush3.msra.mxu0 %v471_v7  ;;  %1975 = vmatprep.subr.mxu1 %v2148_v8  ;;  %v468_v11 = vld [vmem:[%s2609_s3] sm:$0xff]  ;;  %v885_v60 = vld [vmem:[%s2593_s5 + $0x8] sm:$0xff]  ;;  %s2159_s20 = smov 104  }
  0x1b   : > { %s435_s24 = scalar_lea.vmem %s2608_s0, %s1845_s21  ;;  %1941 = vmatprep.subr.mxu0 %v2148_v8  ;;  %1977 = vmatprep.mubr.msk.f32.mxu1 %vm2149_vm1, %v2148_v8  ;;  %v1846_v16 = vld [vmem:[%s2610_s1] ss:$0 sm:$0xff]  ;;  %s2154_s21 = smov 56  }
  0x1c   : > { %v2285_v0 = vld [vmem:[%s435_s24] sm:$0xff]  ;;  %1942 = vmatpush3.msra.mxu0 %v470_v9  ;;  %s2151_s24 = smov 96   ;;  %s429_s0 = sand.u32 1, %s2138_s26  }
  0x1d   : > { %v440_v1 = vsel %vm439_vm0, %v2285_v0, 0.0  ;;  %1943 = vmatprep.subr.mxu0 %v2148_v8  ;;  %v1847_v18 = vld [vmem:[%s2611_s2] ss:$0 sm:$0xff]  ;;  %s1844_s1 = sshll.u32 %s429_s0, 3  ;;  %s1768_s2 = scalar_lea.sflag [#allocation3], %s429_s0 }
  0x1e   : > { %441 = vadd.xlane.f32.xlu0 %v440_v1  ;;  %1944 = vmatpush3.msra.mxu0 %v469_v10  ;;  %v718_v41 = vld [vmem:[%s2593_s5] sm:$0xff] }
  0x1f   : > { %1945 = vmatprep.subr.mxu0 %v2148_v8  ;;  %1976 = vmatpush3.msra.mxu1 %v718_v41 }
  0x20   : > { %1946 = vmatpush3.msra.mxu0 %v468_v11  ;;  %1985 = vmatprep.subr.mxu1 %v2148_v8 }
  0x21   : > { %1950 = vmatprep.subr.mxu0 %v2148_v8 }
  0xa7   : > { %v442_v2 = vpop.xlane.xlu0 %441 }
  0xa8   : > { %v444_v3 = vmul.f32 0.03125, %v442_v2 }
  0xaa   : > { %v445_v4 = vsub.f32 %v2285_v0, %v444_v3 }
  0xac   : > { %v446_v5 = vmul.f32 %v445_v4, %v445_v4 }
  0xae   : > { %v447_v6 = vsel %vm439_vm0, %v446_v5, 0.0 }
  0xaf   : > { %448 = vadd.xlane.f32.xlu0 %v447_v6 }
 0x138   : > { %v449_v12 = vpop.xlane.xlu0 %448 }
 0x139   : > { %v450_v13 = vmul.f32 0.03125, %v449_v12 }
 0x13b   : > { %v451_v14 = vadd.f32 1e-06, %v450_v13 }
 0x13d   : > { %2062 = vrsqrt.f32 %v451_v14 }
 0x14a   : > { %v2063_v15 = vpop.eup %2062 }
 0x14b   : > { %v453_v17 = vmul.f32 %v2063_v15, %v445_v4 }
 0x14d   : > { %v460_v19 = vmul.f32 %v1846_v16, %v453_v17 }
 0x14f   : > { %v467_v20 = vadd.f32 %v1847_v18, %v460_v19  ;;  %v1198_v19 = vld [vmem:[%s2593_s5 + $0x10] sm:$0xff] }
 0x151   : > { %1948 = vmatmul.mubr.msk.f32.vlgmr.msra.gmra.mxu0 %vm439_vm0, %v467_v20 }
 0x152   : > { %1952 = vmatprep.mubr.msk.f32.mxu0 %vm2149_vm1, %v2148_v8 }
 0x211   : > { %v548_v22 = vpop.f32.mrf.mxu0 }
 0x212   : > { %v2325_v23 = vadd.f32 %v1848_v21, %v548_v22 }
 0x213   : > { %v1949_v24 = vpop.f32.mrf.mxu0 }
 0x214   : > { %642 = vrot.lane.b32.xlu0 %v2325_v23, %s2150_s23  ;;  %553 = vrot.lane.b32.xlu1 %v2325_v23, %s2151_s24  ;;  %s2156_s23 = smov 112   ;;  %s2157_s24 = smov 48  }
 0x286   : > { %v554_v25 = vpop.permute.xlu1 %553  ;;  %v643_v26 = vpop.permute.xlu0 %642 }
 0x287   : > { %1951 = vmatpush3.xpose.msk.msra.mxu0 %vm555_vm2, %v554_v25 }
 0x288   : > { %1955 = vmatprep.subr.mxu0 %v2148_v8 }
 0x28a   : > { %1953 = vmatmul.mubr.msk.f32.vlgmr.msra.gmra.mxu0 %vm555_vm2, %v2325_v23 }
 0x28b   : > { %1956 = vmatpush3.msra.mxu0 %v643_v26  ;;  %1957 = vmatprep.mubr.msk.f32.mxu0 %vm2149_vm1, %v2148_v8 }
 0x28c   : > { %1960 = vmatprep.subr.mxu0 %v2148_v8 }
 0x34a   : > { %v626_v27 = vpop.f32.mrf.mxu0 }
 0x34b   : > { %v630_v28 = vmul.f32 0.35355338, %v626_v27 }
 0x34c   : > { %v1954_v29 = vpop.f32.mrf.mxu0 }
 0x34d   : > { %v631_v30 = vsel %vm555_vm2, %v630_v28, -inf }
 0x34e   : > { %632 = vmax.xlane.f32.xlu1 %v631_v30 }
 0x3d7   : > { %v633_v31 = vpop.xlane.xlu1 %632 }
 0x3d8   : > { %v634_v32 = vsub.f32 %v630_v28, %v633_v31 }
 0x3da   : > { %v635_v33 = vmul.f32 1.442695, %v634_v32 }
 0x3dc   : > { %2064 = vpow2.f32 %v635_v33  ;;  %v1439_v33 = vld [vmem:[%s2593_s5 + $0x18] sm:$0xff] }
 0x3e9   : > { %v2065_v34 = vpop.eup %2064 }
 0x3ea   : > { %v637_v35 = vsel %vm555_vm2, %v2065_v34, 0.0 }
 0x3eb   : > { %638 = vadd.xlane.f32.xlu0 %v637_v35 }
 0x401   : > { %721 = vrot.lane.b32.xlu0 %v2325_v23, %s2152_s30 }
 0x405   : > { %719 = vrot.lane.b32.xlu0 %v2325_v23, %s2153_s15  ;;  %s2161_s15 = smov [#allocation2]  }
 0x474   : > { %v639_v36 = vpop.xlane.xlu0 %638 }
 0x475   : > { %2066 = vrcp.f32 %v639_v36 }
 0x478   : > { %v722_v38 = vpop.permute.xlu0 %721 }
 0x47c   : > { %v720_v40 = vpop.permute.xlu0 %719 }
 0x482   : > { %v2067_v37 = vpop.eup %2066 }
 0x483   : > { %v641_v39 = vmul.f32 %v2067_v37, %v2065_v34 }
 0x485   : > { %1958 = vmatmul.mubr.msk.f32.vlgmr.msra.gmra.mxu0 %vm555_vm2, %v641_v39 }
 0x486   : > { %1961 = vmatpush3.xpose.msk.msra.mxu0 %vm555_vm2, %v722_v38  ;;  %1962 = vmatprep.mubr.msk.f32.mxu0 %vm2149_vm1, %v2148_v8 }
 0x487   : > { %1965 = vmatprep.subr.mxu0 %v2148_v8 }
 0x489   : > { %1963 = vmatmul.mubr.msk.f32.vlgmr.msra.gmra.mxu0 %vm555_vm2, %v720_v40 }
 0x48a   : > { %1967 = vmatprep.mubr.msk.f32.mxu0 %vm2149_vm1, %v2148_v8 }
 0x545   : > { %v714_v42 = vpop.f32.mrf.mxu0 }
 0x546   : > { %1978 = vmatmul.mubr.msk.f32.vlgmr.msra.gmra.mxu1 %vm555_vm2, %v714_v42 }
 0x547   : > { %v1959_v43 = vpop.f32.mrf.mxu0  ;;  %1987 = vmatprep.mubr.msk.f32.mxu1 %vm2149_vm1, %v2148_v8 }
 0x548   : > { %v1866_v43 = vld [vmem:[%s2594_s6] ss:$0 sm:$0xff] }
 0x549   : > { %v793_v44 = vpop.f32.mrf.mxu0 }
 0x54a   : > { %v797_v45 = vmul.f32 0.35355338, %v793_v44 }
 0x54b   : > { %v1964_v46 = vpop.f32.mrf.mxu0 }
 0x54c   : > { %v798_v47 = vsel %vm555_vm2, %v797_v45, -inf }
 0x54d   : > { %799 = vmax.xlane.f32.xlu1 %v798_v47 }
 0x55e   : > { %809 = vrot.lane.b32.xlu1 %v2325_v23, %s2154_s21  ;;  %s431_s21 = scalar_lea.vmem [#allocation2], %s1844_s1 }
 0x562   : > { %1034 = vrot.lane.b32.xlu1 %v2325_v23, %s2155_s22  ;;  %s1781_s22 = sshll.u32 %s431_s21, 4  ;;  %s1782_s22 = int_to_ptr.vmem [resolvable:$true] %s1781_s22 }
 0x563   : > { %s2086_s3 = scalar_lea.vmem %s1782_s22, 128 }
 0x564   : > { %p2087_p11 = scmp.ne.s32.totalorder %s1782_s22, %s2086_s3 }
 0x566   : > { %1032 = vrot.lane.b32.xlu1 %v2325_v23, %s2156_s23  ;;  %s2160_s23 = smov 40   ;;  %p2088_p12 = pnand %p2087_p11, %p2270_p5 }
 0x568   : > { %p2089_p13 = pneg %p2088_p12 }
 0x5d6   : > { %v800_v48 = vpop.xlane.xlu1 %799 }
 0x5d7   : > { %v801_v49 = vsub.f32 %v797_v45, %v800_v48 }
 0x5d9   : > { %v802_v50 = vmul.f32 1.442695, %v801_v49 }
 0x5da   : > { %v810_v51 = vpop.permute.xlu1 %809 }
 0x5db   : > { %2068 = vpow2.f32 %v802_v50  ;;  %1966 = vmatpush3.msra.mxu0 %v810_v51 }
 0x5dc   : > { %1970 = vmatprep.subr.mxu0 %v2148_v8 }
 0x5de   : > { %v1035_v61 = vpop.permute.xlu1 %1034 }
 0x5e2   : > { %v1033_v1 = vpop.permute.xlu1 %1032 }
 0x5e8   : > { %v2069_v52 = vpop.eup %2068 }
 0x5e9   : > { %v804_v53 = vsel %vm555_vm2, %v2069_v52, 0.0 }
 0x5ea   : > { %805 = vadd.xlane.f32.xlu0 %v804_v53  ;;  %v1559_v53 = vld [vmem:[%s2597_s9 + $0x38] sm:$0xff] }
 0x600   : > { %1122 = vrot.lane.b32.xlu0 %v2325_v23, %s2157_s24 }
 0x606   : > { %v2362_v54 = vpop.f32.mrf.mxu1 }
 0x608   : > { %v1979_v55 = vpop.f32.mrf.mxu1 }
 0x609   : > { %v1556_v55 = vld [vmem:[%s2597_s9 + $0x20] sm:$0xff] }
 0x673   : > { %v806_v56 = vpop.xlane.xlu0 %805 }
 0x674   : > { %2070 = vrcp.f32 %v806_v56  ;;  %v1555_v56 = vld [vmem:[%s2597_s9 + $0x18] sm:$0xff] }
 0x677   : > { %v1123_v57 = vpop.permute.xlu0 %1122 }
 0x678   : > { %1986 = vmatpush3.msra.mxu1 %v1123_v57  ;;  %v1554_v57 = vld [vmem:[%s2597_s9 + $0x10] sm:$0xff] }
 0x679   : > { %1995 = vmatprep.subr.mxu1 %v2148_v8 }
 0x681   : > { %v2071_v58 = vpop.eup %2070 }
 0x682   : > { %v808_v59 = vmul.f32 %v2071_v58, %v2069_v52  ;;  %v1553_v58 = vld [vmem:[%s2597_s9 + $0x8] sm:$0xff] }
 0x684   : > { %1968 = vmatmul.mubr.msk.f32.vlgmr.msra.gmra.mxu0 %vm555_vm2, %v808_v59  ;;  %v1552_v59 = vld [vmem:[%s2597_s9] sm:$0xff] }
 0x685   : > { %1971 = vmatpush3.msra.mxu0 %v885_v60  ;;  %1972 = vmatprep.mubr.msk.f32.mxu0 %vm2149_vm1, %v2148_v8  ;;  %v1687_v60 = vld [vmem:[%s2599_s11 + $0xf8] sm:$0xff] }
 0x686   : > { %1980 = vmatprep.subr.mxu0 %v2148_v8 }
 0x744   : > { %v881_v62 = vpop.f32.mrf.mxu0 }
 0x745   : > { %1973 = vmatmul.mubr.msk.f32.vlgmr.msra.gmra.mxu0 %vm555_vm2, %v881_v62  ;;  %v1686_v62 = vld [vmem:[%s2599_s11 + $0xf0] sm:$0xff] }
 0x746   : > { %1981 = vmatpush3.xpose.msk.msra.mxu0 %vm555_vm2, %v1035_v61  ;;  %v1969_v63 = vpop.f32.mrf.mxu0  ;;  %1982 = vmatprep.mubr.msk.f32.mxu0 %vm2149_vm1, %v2148_v8  ;;  %v1671_v61 = vld [vmem:[%s2599_s11 + $0x78] sm:$0xff] }
 0x747   : > { %1990 = vmatprep.subr.mxu0 %v2148_v8  ;;  %v1670_v63 = vld [vmem:[%s2599_s11 + $0x70] sm:$0xff] }
 0x749   : > { %1983 = vmatmul.mubr.msk.f32.vlgmr.msra.gmra.mxu0 %vm555_vm2, %v1033_v1  ;;  %v1685_v1 = vld [vmem:[%s2599_s11 + $0xe8] sm:$0xff] }
 0x74a   : > { %1992 = vmatprep.mubr.msk.f32.mxu0 %vm2149_vm1, %v2148_v8  ;;  %1991 = vmatpush3.msra.mxu0 %v1198_v19  ;;  %v1681_v19 = vld [vmem:[%s2599_s11 + $0xc8] sm:$0xff] }
 0x74b   : > { %2000 = vmatprep.subr.mxu0 %v2148_v8 }
 0x805   : > { %v955_v2 = vpop.f32.mrf.mxu0 }
 0x806   : > { %v1029_v34 = vadd.f32 %v2362_v54, %v955_v2  ;;  %v1557_v54 = vld [vmem:[%s2597_s9 + $0x28] sm:$0xff] }
 0x807   : > { %v1974_v3 = vpop.f32.mrf.mxu0  ;;  %v1669_v2 = vld [vmem:[%s2599_s11 + $0x68] sm:$0xff] }
 0x809   : > { %v1106_v4 = vpop.f32.mrf.mxu0 }
 0x80a   : > { %v1110_v5 = vmul.f32 0.35355338, %v1106_v4 }
 0x80b   : > { %v1984_v6 = vpop.f32.mrf.mxu0 }
 0x80c   : > { %v1111_v7 = vsel %vm555_vm2, %v1110_v5, -inf }
 0x80d   : > { %1112 = vmax.xlane.f32.xlu1 %v1111_v7  ;;  %v1867_v7 = vld [vmem:[%s2595_s7] ss:$0 sm:$0xff] }
 0x896   : > { %v1113_v9 = vpop.xlane.xlu1 %1112 }
 0x897   : > { %v1114_v10 = vsub.f32 %v1110_v5, %v1113_v9 }
 0x899   : > { %v1115_v11 = vmul.f32 1.442695, %v1114_v10  ;;  %v1868_v10 = vld [vmem:[%s2596_s8] ss:$0 sm:$0xff] }
 0x89b   : > { %2072 = vpow2.f32 %v1115_v11 }
 0x8a8   : > { %v2073_v12 = vpop.eup %2072 }
 0x8a9   : > { %v1117_v13 = vsel %vm555_vm2, %v2073_v12, 0.0 }
 0x8aa   : > { %1118 = vadd.xlane.f32.xlu0 %v1117_v13  ;;  %v1684_v13 = vld [vmem:[%s2599_s11 + $0xe0] sm:$0xff] }
 0x8c0   : > { %1275 = vrot.lane.b32.xlu0 %v2325_v23, %s2158_s16 }
 0x8c4   : > { %1273 = vrot.lane.b32.xlu0 %v2325_v23, %s2159_s20  ;;  %s1872_s20 = sshll.u32 %s2253_s29, 7  ;;  %s2090_s29 = sshll.u32 %s2161_s15, 4  ;;  %s2091_s29 = int_to_ptr.vmem [resolvable:$false] %s2090_s29 }
 0x8c5   : > { %s1779_s30 = scalar_lea.hbm %s2601_s13, %s1872_s20  ;;  %s2092_s1 = scalar_lea.vmem %s2091_s29, 256 }
 0x8c6   : > { %p2093_p0 = scmp.lt.s32.totalorder %s1782_s22, %s2091_s29  ;;  %p2094_p1 = scmp.lt.s32.totalorder %s2092_s1, %s2086_s3 }
 0x8c8   : > { %p2095_p2 = por %p2094_p1, %p2093_p0 }
 0x8ca   : > { %p2096_p3 = pnand %p2095_p2, %p2089_p13 }
 0x933   : > { %v1119_v14 = vpop.xlane.xlu0 %1118 }
 0x934   : > { %2074 = vrcp.f32 %v1119_v14  ;;  %v1668_v14 = vld [vmem:[%s2599_s11 + $0x60] sm:$0xff] }
 0x937   : > { %v1276_v16 = vpop.permute.xlu0 %1275 }
 0x93b   : > { %v1274_v18 = vpop.permute.xlu0 %1273 }
 0x941   : > { %v2075_v15 = vpop.eup %2074 }
 0x942   : > { %v1121_v17 = vmul.f32 %v2075_v15, %v2073_v12  ;;  %v1683_v15 = vld [vmem:[%s2599_s11 + $0xd8] sm:$0xff] }
 0x944   : > { %1988 = vmatmul.mubr.msk.f32.vlgmr.msra.gmra.mxu1 %vm555_vm2, %v1121_v17  ;;  %v1682_v17 = vld [vmem:[%s2599_s11 + $0xd0] sm:$0xff] }
 0x945   : > { %1996 = vmatpush3.xpose.msk.msra.mxu1 %vm555_vm2, %v1276_v16  ;;  %1997 = vmatprep.mubr.msk.f32.mxu1 %vm2149_vm1, %v2148_v8  ;;  %v1667_v16 = vld [vmem:[%s2599_s11 + $0x58] sm:$0xff] }
 0x946   : > { %2005 = vmatprep.subr.mxu1 %v2148_v8 }
 0x948   : > { %1998 = vmatmul.mubr.msk.f32.vlgmr.msra.gmra.mxu1 %vm555_vm2, %v1274_v18  ;;  %v1666_v18 = vld [vmem:[%s2599_s11 + $0x50] sm:$0xff] }
 0x949   : > { %2007 = vmatprep.mubr.msk.f32.mxu1 %vm2149_vm1, %v2148_v8  ;;  %2006 = vmatpush3.msra.mxu1 %v1439_v33  ;;  %v1659_v33 = vld [vmem:[%s2599_s11 + $0x18] sm:$0xff] }
 0x94a   : > { %1904 = vmatprep.subr.mxu1 %v1687_v60  ;;  %v1870_v60 = vld [vmem:[%s2600_s12] ss:$0 sm:$0xff] }
 0xa04   : > { %v1194_v20 = vpop.f32.mrf.mxu1 }
 0xa05   : > { %1993 = vmatmul.mubr.msk.f32.vlgmr.msra.gmra.mxu0 %vm555_vm2, %v1194_v20  ;;  %v1665_v20 = vld [vmem:[%s2599_s11 + $0x48] sm:$0xff] }
 0xa06   : > { %v1989_v21 = vpop.f32.mrf.mxu1  ;;  %2002 = vmatprep.mubr.msk.f32.mxu0 %vm2149_vm1, %v2148_v8 }
 0xa07   : > { %v1680_v21 = vld [vmem:[%s2599_s11 + $0xc0] sm:$0xff] }
 0xa08   : > { %v1347_v22 = vpop.f32.mrf.mxu1 }
 0xa09   : > { %v1351_v24 = vmul.f32 0.35355338, %v1347_v22  ;;  %v1664_v22 = vld [vmem:[%s2599_s11 + $0x40] sm:$0xff] }
 0xa0a   : > { %v1999_v25 = vpop.f32.mrf.mxu1 }
 0xa0b   : > { %v1352_v26 = vsel %vm555_vm2, %v1351_v24, -inf  ;;  %v1663_v25 = vld [vmem:[%s2599_s11 + $0x38] sm:$0xff] }
 0xa0c   : > { %1353 = vmax.xlane.f32.xlu1 %v1352_v26  ;;  %v1678_v26 = vld [vmem:[%s2599_s11 + $0xb0] sm:$0xff] }
 0xa1d   : > { %1363 = vrot.lane.b32.xlu1 %v2325_v23, %s2160_s23 }
 0xa95   : > { %v1354_v27 = vpop.xlane.xlu1 %1353 }
 0xa96   : > { %v1355_v28 = vsub.f32 %v1351_v24, %v1354_v27  ;;  %v1679_v24 = vld [vmem:[%s2599_s11 + $0xb8] sm:$0xff]  ;;  %v1662_v27 = vld [vmem:[%s2599_s11 + $0x30] sm:$0xff] }
 0xa98   : > { %v1356_v29 = vmul.f32 1.442695, %v1355_v28  ;;  %v1677_v28 = vld [vmem:[%s2599_s11 + $0xa8] sm:$0xff] }
 0xa99   : > { %v1364_v30 = vpop.permute.xlu1 %1363 }
 0xa9a   : > { %2076 = vpow2.f32 %v1356_v29  ;;  %2001 = vmatpush3.msra.mxu0 %v1364_v30  ;;  %v1661_v29 = vld [vmem:[%s2599_s11 + $0x28] sm:$0xff]  ;;  %v1676_v30 = vld [vmem:[%s2599_s11 + $0xa0] sm:$0xff] }
 0xa9b   : > { %1599 = vmatprep.subr.mxu0 %v1559_v53 }
 0xaa7   : > { %v2077_v31 = vpop.eup %2076 }
 0xaa8   : > { %v1358_v32 = vsel %vm555_vm2, %v2077_v31, 0.0 }
 0xaa9   : > { %1359 = vadd.xlane.f32.xlu0 %v1358_v32  ;;  %v1675_v32 = vld [vmem:[%s2599_s11 + $0x98] sm:$0xff] }
 0xac5   : > { %v1268_v35 = vpop.f32.mrf.mxu0 }
 0xac6   : > { %v1272_v36 = vadd.f32 %v1268_v35, %v1029_v34  ;;  %v1674_v34 = vld [vmem:[%s2599_s11 + $0x90] sm:$0xff] }
 0xac7   : > { %v1994_v23 = vpop.f32.mrf.mxu0  ;;  %v1658_v35 = vld [vmem:[%s2599_s11 + $0x10] sm:$0xff] }
 0xac8   : > { %v1657_v23 = vld [vmem:[%s2599_s11 + $0x8] sm:$0xff] }
 0xb32   : > { %v1360_v37 = vpop.xlane.xlu0 %1359 }
 0xb33   : > { %2078 = vrcp.f32 %v1360_v37  ;;  %v1672_v37 = vld [vmem:[%s2599_s11 + $0x80] sm:$0xff] }
 0xb40   : > { %v2079_v38 = vpop.eup %2078 }
 0xb41   : > { %v1362_v39 = vmul.f32 %v2079_v38, %v2077_v31  ;;  %v1660_v31 = vld [vmem:[%s2599_s11 + $0x20] sm:$0xff] }
 0xb42   : > { %v1656_v38 = vld [vmem:[%s2599_s11] sm:$0xff] }
 0xb43   : > { %2003 = vmatmul.mubr.msk.f32.vlgmr.msra.gmra.mxu0 %vm555_vm2, %v1362_v39  ;;  %v1562_v39 = vlaneseq }
 0xb44   : > { %1639 = vmatprep.mubr.f32.mxu0 %v2148_v8 }
 0xc03   : > { %v1435_v40 = vpop.f32.mrf.mxu0 }
 0xc04   : > { %2008 = vmatmul.mubr.msk.f32.vlgmr.msra.gmra.mxu1 %vm555_vm2, %v1435_v40  ;;  %v1563_v40 = vshrl.u32 %v1562_v39, 7 }
 0xc05   : > { %v2004_v41 = vpop.f32.mrf.mxu0  ;;  %1905 = vmatpush3.msra.mxu1 %v1671_v61 }
 0xc06   : > { %1906 = vmatprep.subr.mxu1 %v1686_v62  ;;  %v1564_v41 = vsub.s32 0, %v1563_v40 }
 0xc07   : > { %1907 = vmatpush3.msra.mxu1 %v1670_v63 }
 0xc08   : > { %1908 = vmatprep.subr.mxu1 %v1685_v1 }
 0xc09   : > { %1909 = vmatpush3.msra.mxu1 %v1669_v2 }
 0xc0a   : > { %1910 = vmatprep.subr.mxu1 %v1684_v13 }
 0xc0b   : > { %1911 = vmatpush3.msra.mxu1 %v1668_v14 }
 0xc0c   : > { %1912 = vmatprep.subr.mxu1 %v1683_v15 }
 0xc0d   : > { %1913 = vmatpush3.msra.mxu1 %v1667_v16 }
 0xc0e   : > { %1914 = vmatprep.subr.mxu1 %v1682_v17 }
 0xc0f   : > { %1915 = vmatpush3.msra.mxu1 %v1666_v18 }
 0xc10   : > { %1916 = vmatprep.subr.mxu1 %v1681_v19 }
 0xc11   : > { %1917 = vmatpush3.msra.mxu1 %v1665_v20 }
 0xc12   : > { %1918 = vmatprep.subr.mxu1 %v1680_v21 }
 0xc13   : > { %1919 = vmatpush3.msra.mxu1 %v1664_v22 }
 0xc14   : > { %1920 = vmatprep.subr.mxu1 %v1679_v24 }
 0xc15   : > { %1921 = vmatpush3.msra.mxu1 %v1663_v25 }
 0xc16   : > { %1922 = vmatprep.subr.mxu1 %v1678_v26 }
 0xc17   : > { %1923 = vmatpush3.msra.mxu1 %v1662_v27 }
 0xc18   : > { %1924 = vmatprep.subr.mxu1 %v1677_v28 }
 0xc19   : > { %1925 = vmatpush3.msra.mxu1 %v1661_v29 }
 0xc1a   : > { %1926 = vmatprep.subr.mxu1 %v1676_v30 }
 0xc1b   : > { %1927 = vmatpush3.msra.mxu1 %v1660_v31 }
 0xc1c   : > { %1928 = vmatprep.subr.mxu1 %v1675_v32 }
 0xc1d   : > { %1929 = vmatpush3.msra.mxu1 %v1659_v33 }
 0xc1e   : > { %1930 = vmatprep.subr.mxu1 %v1674_v34 }
 0xc1f   : > { %1931 = vmatpush3.msra.mxu1 %v1658_v35 }
 0xcc4   : > { %v1509_v42 = vpop.f32.mrf.mxu1 }
 0xcc5   : > { %v1513_v44 = vadd.f32 %v1509_v42, %v1272_v36  ;;  %v1673_v36 = vld [vmem:[%s2599_s11 + $0x88] sm:$0xff]  ;;  %v1560_v42 = vld [vmem:[%s2598_s10] sm:$0x3] }
 0xcc6   : > { %v2009_v45 = vpop.f32.mrf.mxu1  ;;  %1932 = vmatprep.subr.mxu1 %v1673_v36 }
 0xcc7   : > { %v1521_v46 = vadd.f32 %v1866_v43, %v1513_v44  ;;  %1933 = vmatpush3.msra.mxu1 %v1657_v23  ;;  %v1568_v43 = vsub.s32 1, %v1563_v40  ;;  %v1565_v44 = vrot.slane %v1560_v42, %v1564_v41 }
 0xcc8   : > { %1934 = vmatprep.subr.mxu1 %v1672_v37 }
 0xcc9   : > { %v2413_v47 = vadd.f32 %v1521_v46, %v2285_v0  ;;  %v1558_v0 = vld [vmem:[%s2597_s9 + $0x30] sm:$0xff]  ;;  %1935 = vmatpush3.msra.mxu1 %v1656_v38  ;;  %v1569_v45 = vrot.slane %v1560_v42, %v1568_v43 }
 0xcca   : > { %1600 = vmatpush1.msra.mxu0 %v1558_v0 }
 0xccb   : > { %v1525_v48 = vsel %vm439_vm0, %v2413_v47, 0.0  ;;  %1601 = vmatprep.subr.mxu0 %v1557_v54 }
 0xccc   : > { %1526 = vadd.xlane.f32.xlu1 %v1525_v48  ;;  %1602 = vmatpush1.msra.mxu0 %v1556_v55 }
 0xccd   : > { %1603 = vmatprep.subr.mxu0 %v1555_v56 }
 0xcce   : > { %1604 = vmatpush1.msra.mxu0 %v1554_v57 }
 0xccf   : > { %1605 = vmatprep.subr.mxu0 %v1553_v58 }
 0xcd0   : > { %1606 = vmatpush1.msra.mxu0 %v1552_v59 }
 0xd55   : > { %v1527_v8 = vpop.xlane.xlu1 %1526 }
 0xd56   : > { %v1528_v49 = vmul.f32 0.03125, %v1527_v8 }
 0xd58   : > { %v1529_v50 = vsub.f32 %v2413_v47, %v1528_v49 }
 0xd5a   : > { %v1530_v51 = vmul.f32 %v1529_v50, %v1529_v50 }
 0xd5c   : > { %v1531_v52 = vsel %vm439_vm0, %v1530_v51, 0.0 }
 0xd5d   : > { %1532 = vadd.xlane.f32.xlu0 %v1531_v52 }
 0xde6   : > { %v1533_v3 = vpop.xlane.xlu0 %1532 }
 0xde7   : > { %v1534_v4 = vmul.f32 0.03125, %v1533_v3 }
 0xde9   : > { %v1535_v5 = vadd.f32 1e-06, %v1534_v4 }
 0xdeb   : > { %2080 = vrsqrt.f32 %v1535_v5 }
 0xdf8   : > { %v2081_v6 = vpop.eup %2080 }
 0xdf9   : > { %v1537_v9 = vmul.f32 %v2081_v6, %v1529_v50 }
 0xdfb   : > { %v1544_v11 = vmul.f32 %v1867_v7, %v1537_v9 }
 0xdfd   : > { %v1551_v12 = vadd.f32 %v1868_v10, %v1544_v11 }
 0xdff   : > { %1869 = vmatmul.mubr.msk.f32.vlgmr.msra.gmra.mxu0 %vm439_vm0, %v1551_v12 }
 0xebf   : > { %v1641_v46 = vpop.f32.mrf.mxu0 }
 0xec0   : > { %v1642_v48 = vadd.f32 %v1641_v46, %v1565_v44 }
 0xec1   : > { %v1643_v8 = vpop.f32.mrf.mxu0 }
 0xec2   : > { %v1648_v49 = vmul.f32 0.70710677, %v1642_v48  ;;  %v1644_v50 = vadd.f32 %v1643_v8, %v1569_v45  ;;  %v1646_v56 = vmul.f32 0.5, %v1642_v48 }
 0xec4   : > { %2082 = verf.f32 %v1648_v49  ;;  %v1649_v51 = vmul.f32 0.70710677, %v1644_v50  ;;  %v1647_v54 = vmul.f32 0.5, %v1644_v50 }
 0xec6   : > { %2084 = verf.f32 %v1649_v51 }
 0xed1   : > { %v2083_v52 = vpop.eup %2082 }
 0xed2   : > { %v1652_v0 = vadd.f32 1.0, %v2083_v52 }
 0xed3   : > { %v2085_v53 = vpop.eup %2084 }
 0xed4   : > { %v1653_v55 = vadd.f32 1.0, %v2085_v53  ;;  %v1654_v58 = vmul.f32 %v1652_v0, %v1646_v56 }
 0xed6   : > { %v1655_v57 = vmul.f32 %v1653_v55, %v1647_v54 }
 0xed8   : > { %1759 = vmatprep.mubr.f32.mxu1 %v1655_v57 }
 0xed9   : > { %1760 = vmatmul.mubr.f32.vlgmr.msra.gmra.mxu1 %v1654_v58 }
 0xf99   : > { %v1936_v59 = vpop.f32.mrf.mxu1 }
 0xf9b   : > { %v1937_v61 = vpop.f32.mrf.mxu1 }
 0xf9c   : > { %v1938_v62 = vadd.f32 %v1937_v61, %v1936_v59 }
 0xf9e   : > { %v1762_v63 = vadd.f32 %v1938_v62, %v1870_v60 }
 0xfa0   : > { %v1765_v1 = vadd.f32 %v1762_v63, %v2413_v47 }
 0xfa2   : > { %1766 = vst.msk [vmem:[%s431_s21] sm:$0xff] %vm439_vm0, %v1765_v1 }
 0xfa3   : > { %2099 = shalt.err (!%p2096_p3)
}
 0xfa4   : > { %s2100_s16 = scalar_lea.hbm %s1779_s30, 128  ;;  %s2104_s21 = scalar_lea.hbm %s2601_s13, 256 }
 0xfa5   : > { %p2101_p4 = scmp.ne.s32.totalorder %s1779_s30, %s2100_s16  ;;  %p2105_p9 = scmp.lt.s32.totalorder %s1779_s30, %s2601_s13 }
 0xfa6   : > { %p2106_p10 = scmp.lt.s32.totalorder %s2104_s21, %s2100_s16 }
 0xfa7   : > { %p2102_p7 = pnand %p2101_p4, %p2270_p5 }
 0xfa8   : > { %p2107_p11 = por %p2106_p10, %p2105_p9 }
 0xfa9   : > { %p2103_p8 = pneg %p2102_p7 }
 0xfab   : > { %p2108_p12 = pnand %p2107_p11, %p2103_p8 }
 0xfad   : > { %2111 = shalt.err (!%p2108_p12)
}
 0xfae   : > { %2010 = dma.vmem_to_hbm [thread:$0]  (%p2270_p5), %s1782_s22, 128, %s1779_s30, %s1768_s2  }
 0xfaf PF: > { %p2016_p13 = scmp.ge.s32.totalorder %s2146_s28, 2  ;;  %s1793_s3 = sand.u32 1, %s2134_s25  }
 0xfb0   : > { %s1794_s15 = scalar_lea.sflag [#allocation3], %s1793_s3 }
 0xfb1   : > { %p2013_p0 = pnand %p2016_p13, %p2274_p6 }
 0xfb3   : > { %p2014_p1 = pneg %p2013_p0 }
 0xfb5   : > { %2129 = dma.done.wait (%p2014_p1), %s1794_s15, 128  }
 0xfb6   : > { %2131 = vsyncadd (%p2014_p1), %s1794_s15, 4294967168  ;;  %p23_p2 = scmp.ge.s32.totalorder %s2257_s14, 4   ;;  %s2612_s25 = smov %s2138_s26 }
 0xfb7   : > { %s2613_s26 = smov %s2142_s27  ;;  %s2614_s27 = smov %s2268_s17 }
 0xfb8   : > { %s2615_s28 = smov %s2257_s14  ;;  %25 = sbr.rel (!%p23_p2) target bundleno = 8 (0x8), region = 107 }
 0xfbd   :  { %1799 = vsyncpa [#allocation3], 1 }
 0xfbe   :  { %1801 = vsyncpa [#allocation3 + $0x1], 1 }

</bundles_post_ra>
